<compile_context>
chip_gen: v7x
topology: tpu7x:2x2x1
jax: 0.10.0
libtpu: 0.0.40
codegen_flags: <defaults>
</compile_context>

<pallas_src>
import jax
import jax.numpy as jnp
from jax import lax
from jax.experimental import pallas as pl
from jax.experimental.pallas import tpu as pltpu


# ---------------------------------------------------------------------------
# In-kernel math helpers
# ---------------------------------------------------------------------------

def _mish(y):
    """Mish in f32 with one exp + one divide.

    mish(y) = y * tanh(softplus(y)); with t = 1 + e^y,
    tanh(softplus(y)) = (t^2 - 1) / (t^2 + 1).  y is clamped before the exp so t^2
    cannot overflow; for y >= 30 the ratio is exactly 1.0 in f32, i.e. mish(y) == y.
    """
    e = jnp.exp(jnp.minimum(y, 30.0))
    t2 = (1.0 + e) * (1.0 + e)
    return y * ((t2 - 1.0) / (t2 + 1.0))


def _tap_w(y3d, kx):
    """3x3-conv W tap of a (rows, W, C) tile: value[:, w] = y[:, w + kx - 1] with the
    conv's zero padding at the W boundary.  kx in {0, 1, 2}."""
    if kx == 1:
        return y3d
    rows, w, c = y3d.shape
    zcol = jnp.zeros((rows, 1, c), y3d.dtype)
    if kx == 0:                                     # value[w] = y[w-1]
        return jnp.concatenate([zcol, y3d[:, : w - 1, :]], axis=1)
    return jnp.concatenate([y3d[:, 1:, :], zcol], axis=1)   # kx == 2: value[w] = y[w+1]


# ---------------------------------------------------------------------------
# Fused block kernel: 1x1 ConvBNMish -> 3x3 ConvBNMish (-> + residual)
# ---------------------------------------------------------------------------

def _block_body(xt_ref, xm_ref, xb_ref, w1_ref, b1_ref, w2_ref, b2_ref):
    th, w, cin = xm_ref.shape           # row tile of the input
    cmid = w1_ref.shape[1]
    cout = w2_ref.shape[2]
    i = pl.program_id(1)
    last = pl.num_programs(1) - 1
    tap_dt = w2_ref.dtype               # matmul/tap dtype (bf16 on v6e/v7x if weights are)

    w1 = w1_ref[...]
    b1 = b1_ref[...]

    def conv1(x):                        # (rows, W, Cin) -> (rows, W, Cmid), BN bias + Mish
        rows = x.shape[0]
        y = jnp.dot(x.reshape(rows * w, cin), w1, preferred_element_type=jnp.float32)
        return _mish(y + b1).reshape(rows, w, cmid)

    # ---- 1x1 conv (BN scale folded into w1) + Mish.  The row tile and the two clamped
    # halo rows are handled separately: no (th+2, W, Cin) input-slab copy in VMEM.
    y1_mid = conv1(xm_ref[...])
    # Halo rows that play the 3x3 conv's zero-padding role (above row 0 / below row H-1)
    # must be exactly zero; the clamped rows loaded there are dummies.
    y1_top = conv1(xt_ref[...]) * (i > 0).astype(jnp.float32)
    y1_bot = conv1(xb_ref[...]) * (i < last).astype(jnp.float32)

    # (th+2, W, Cmid) bottleneck slab; cast to the matmul dtype BEFORE building taps so
    # the tap intermediates are half-width when weights are bf16.
    y1 = jnp.concatenate([y1_top, y1_mid, y1_bot], axis=0).astype(tap_dt)

    # ---- 3x3 conv, built entirely in VMEM (no HBM im2col) ----
    # W-direction taps grouped along lanes: (th+2, W, 3*Cmid); the (kx, c) lane order
    # matches w2's HWIO -> (ky, 3*Cmid, Cout) reshape done in the wrapper.
    z = jnp.concatenate([_tap_w(y1, 0), y1, _tap_w(y1, 2)], axis=-1)

    # Three accumulated K = 3*Cmid matmuls, one per kernel row ky (dy window over the
    # slab rows).  Much smaller VMEM footprint than a single K = 9*Cmid concat.
    acc = jnp.dot(z[0:th].reshape(th * w, 3 * cmid), w2_ref[0],
                  preferred_element_type=jnp.float32)
    for ky in (1, 2):
        acc = acc + jnp.dot(z[ky:ky + th].reshape(th * w, 3 * cmid), w2_ref[ky],
                            preferred_element_type=jnp.float32)

    return _mish(acc + b2_ref[...]).reshape(th, w, cout)


def _fused_block_kernel(xt_ref, xm_ref, xb_ref, w1_ref, b1_ref, w2_ref, b2_ref, o_ref):
    o_ref[...] = _block_body(xt_ref, xm_ref, xb_ref,
                             w1_ref, b1_ref, w2_ref, b2_ref).astype(o_ref.dtype)


def _fused_block_res_kernel(xt_ref, xm_ref, xb_ref, w1_ref, b1_ref, w2_ref, b2_ref,
                            res_ref, o_ref):
    y2 = _block_body(xt_ref, xm_ref, xb_ref, w1_ref, b1_ref, w2_ref, b2_ref)
    o_ref[...] = (y2 + res_ref[...].astype(jnp.float32)).astype(o_ref.dtype)


# ---------------------------------------------------------------------------
# VMEM-aware tiling
# ---------------------------------------------------------------------------

def _vmem_capacity_bytes():
    try:
        return int(pltpu.get_tpu_info().vmem_capacity_bytes)
    except Exception:
        return 64 * 1024 * 1024          # assume the smallest per-core VMEM (v7x)


def _step_footprint_bytes(th, w, cin, cmid, cout, act_bytes, w_bytes):
    """Rough per-grid-step VMEM footprint: double-buffered pipeline I/O + weights +
    in-kernel intermediates (conservative: always counts the residual input)."""
    f32 = 4
    rows = th + 2
    io = 2 * ((rows * w * cin) * act_bytes          # input row tile + 2 halo rows
              + (th * w * cout) * act_bytes         # residual tile (last block)
              + (th * w * cout) * act_bytes)        # output tile
    weights = 2 * (cin * cmid + 9 * cmid * cout) * w_bytes + 2 * (cmid + cout) * f32
    internal = (rows * w * cmid * (f32 + w_bytes)   # y1 (f32) + cast copy
                + rows * w * 3 * cmid * w_bytes     # kx-grouped tap slab
                + 2 * th * w * cout * f32)          # f32 accumulator + activated copy
    return io + weights + internal


def _pick_row_tile(n, h, w, cin, cmid, cout, act_bytes, w_bytes, budget):
    """Largest divisor of H whose per-step footprint fits the VMEM budget, preferring
    >= 8 total grid steps so dual-TensorCore parts (v7x) get balanced work."""
    divisors = [d for d in range(h, 0, -1) if h % d == 0]
    fitting = [d for d in divisors
               if _step_footprint_bytes(d, w, cin, cmid, cout, act_bytes, w_bytes)
               <= budget]
    if not fitting:
        return 1
    for d in fitting:                    # descending: largest tile with enough steps
        if n * (h // d) >= 8:
            return d
    return fitting[0]                    # tiny images: fewest steps wins


# ---------------------------------------------------------------------------
# Wrappers
# ---------------------------------------------------------------------------

def fused_conv_block(x_nhwc, w1, b1, w2, b2, residual=None, *, row_tile=None):
    """One (ConvBNMish 1x1 -> ConvBNMish 3x3) block, optionally fusing a residual add.

    x_nhwc: (N, H, W, Cin)      w1: (Cin, Cmid)           (BN scale folded in)
    w2:     (3, 3*Cmid, Cout)   b1/b2: (1, Cmid)/(1, Cout) (folded BN bias, f32)
    """
    n, h, w, cin = x_nhwc.shape
    cmid = w1.shape[1]
    cout = w2.shape[2]
    act_bytes = x_nhwc.dtype.itemsize
    w_bytes = w2.dtype.itemsize

    cap = _vmem_capacity_bytes()
    if row_tile is None:
        th = _pick_row_tile(n, h, w, cin, cmid, cout, act_bytes, w_bytes,
                            budget=int(cap * 0.6))
    else:
        th = row_tile
    assert h % th == 0, (h, th)
    fp = _step_footprint_bytes(th, w, cin, cmid, cout, act_bytes, w_bytes)
    vmem_limit = min(int(cap * 0.9), max(32 * 1024 * 1024, int(fp * 1.5)))

    def rows_idx(b, i):
        return (b, i, 0, 0)

    in_specs = [
        # one-row halo above (clamped at the top edge; zeroed in-kernel),
        pl.BlockSpec((None, 1, w, cin),
                     lambda b, i: (b, jnp.maximum(i * th - 1, 0), 0, 0)),
        # the row tile itself,
        pl.BlockSpec((None, th, w, cin), rows_idx),
        # one-row halo below (clamped at the bottom edge; zeroed in-kernel),
        pl.BlockSpec((None, 1, w, cin),
                     lambda b, i: (b, jnp.minimum((i + 1) * th, h - 1), 0, 0)),
        # weights / folded-BN biases: constant index map -> fetched once, stay resident.
        pl.BlockSpec((cin, cmid), lambda b, i: (0, 0)),
        pl.BlockSpec((1, cmid), lambda b, i: (0, 0)),
        pl.BlockSpec((3, 3 * cmid, cout), lambda b, i: (0, 0, 0)),
        pl.BlockSpec((1, cout), lambda b, i: (0, 0)),
    ]
    args = [x_nhwc, x_nhwc, x_nhwc, w1, b1, w2, b2]
    kernel = _fused_block_kernel
    if residual is not None:
        in_specs.append(pl.BlockSpec((None, th, w, cout), rows_idx))
        args.append(residual)
        kernel = _fused_block_res_kernel

    flops = 2 * n * h * w * (cin * cmid + 9 * cmid * cout)
    bytes_accessed = (n * h * w * (cin + cout) * act_bytes
                      + (cin * cmid + 9 * cmid * cout) * w_bytes)
    if residual is not None:
        flops += n * h * w * cout
        bytes_accessed += n * h * w * cout * act_bytes
    cost = pl.CostEstimate(flops=flops,
                           transcendentals=n * h * w * (cmid + cout),
                           bytes_accessed=bytes_accessed)

    return pl.pallas_call(
        kernel,
        out_shape=jax.ShapeDtypeStruct((n, h, w, cout), x_nhwc.dtype),
        grid_spec=pltpu.PrefetchScalarGridSpec(
            num_scalar_prefetch=0,
            grid=(n, h // th),
            in_specs=in_specs,
            out_specs=pl.BlockSpec((None, th, w, cout), rows_idx),
        ),
        compiler_params=pltpu.CompilerParams(
            dimension_semantics=("parallel", "parallel"),
            vmem_limit_bytes=vmem_limit,
        ),
        cost_estimate=cost,
    )(*args)


def residual_block(x_nchw, params):
    """Pallas implementation of ResidualBlock.forward: x + blocks(x). NCHW in/out."""
    x = jnp.transpose(x_nchw, (0, 2, 3, 1))          # NCHW -> NHWC, once
    if not params:
        return jnp.transpose(x + x, (0, 3, 1, 2))
    dt = x.dtype
    y = x
    nb = len(params)
    for bidx, p in enumerate(params):
        # Fold the BN scale into the conv weights (kernel only adds the folded bias) and
        # cast the folded weights to the activation dtype (bf16-friendly on v6e/v7x).
        w1 = (p["w1"] * p["scale1"]).astype(dt)                       # (Cin, Cmid)
        cmid = w1.shape[1]
        w2 = p["w2"] * p["scale2"].reshape(1, 1, 1, -1)               # (3,3,Cmid,Cout) HWIO
        w2 = w2.reshape(3, 3 * cmid, -1).astype(dt)                   # (3, 3*Cmid, Cout)
        res = x if bidx == nb - 1 else None   # residual add fused into the last block
        y = fused_conv_block(y, w1, p["bias1"].astype(jnp.float32),
                             w2, p["bias2"].astype(jnp.float32), residual=res)
    return jnp.transpose(y, (0, 3, 1, 2))            # NHWC -> NCHW, once


# ---------------------------------------------------------------------------
# Deterministic parameter init (BN folded into per-channel scale/bias)
# ---------------------------------------------------------------------------

def init_params(key, channels, num_blocks, eps=1e-5):
    cmid = channels // 2
    params = []
    for _ in range(num_blocks):
        key, *ks = jax.random.split(key, 11)
        w1 = 0.1 * jax.random.normal(ks[0], (channels, cmid), jnp.float32)        # 1x1 conv
        g1 = 1.0 + 0.1 * jax.random.normal(ks[1], (cmid,), jnp.float32)
        b1 = 0.1 * jax.random.normal(ks[2], (cmid,), jnp.float32)
        m1 = 0.1 * jax.random.normal(ks[3], (cmid,), jnp.float32)
        v1 = jax.random.uniform(ks[4], (cmid,), jnp.float32, 0.5, 1.5)
        w2 = 0.1 * jax.random.normal(ks[5], (3, 3, cmid, channels), jnp.float32)  # 3x3, HWIO
        g2 = 1.0 + 0.1 * jax.random.normal(ks[6], (channels,), jnp.float32)
        b2 = 0.1 * jax.random.normal(ks[7], (channels,), jnp.float32)
        m2 = 0.1 * jax.random.normal(ks[8], (channels,), jnp.float32)
        v2 = jax.random.uniform(ks[9], (channels,), jnp.float32, 0.5, 1.5)
        s1 = g1 / jnp.sqrt(v1 + eps)
        s2 = g2 / jnp.sqrt(v2 + eps)
        params.append(dict(
            w1=w1, scale1=s1.reshape(1, -1), bias1=(b1 - m1 * s1).reshape(1, -1),
            w2=w2, scale2=s2.reshape(1, -1), bias2=(b2 - m2 * s2).reshape(1, -1),
        ))
    return params


# ---------------------------------------------------------------------------
# Pure-JAX reference for validation
# ---------------------------------------------------------------------------

def _mish_ref(y):
    sp = jnp.maximum(y, 0.0) + jnp.log1p(jnp.exp(-jnp.abs(y)))
    return y * jnp.tanh(sp)


def ref_residual_block(x_nchw, params):
    x = jnp.transpose(x_nchw, (0, 2, 3, 1))
    y = x
    for p in params:
        w1 = p["w1"].reshape(1, 1, *p["w1"].shape)
        y = lax.conv_general_dilated(y, w1, (1, 1), "VALID",
                                     dimension_numbers=("NHWC", "HWIO", "NHWC"))
        y = _mish_ref(y * p["scale1"] + p["bias1"])
        y = lax.conv_general_dilated(y, p["w2"], (1, 1), "SAME",
                                     dimension_numbers=("NHWC", "HWIO", "NHWC"))
        y = _mish_ref(y * p["scale2"] + p["bias2"])
    return jnp.transpose(x + y, (0, 3, 1, 2))


if __name__ == "__main__":
    key = jax.random.PRNGKey(0)
    key, kx = jax.random.split(key)

    N, C, H, W = 2, 16, 16, 16   # channels must be even (channels // 2 bottleneck)
    num_blocks = 2

    x = jax.random.normal(kx, (N, C, H, W), jnp.float32)   # PyTorch-style NCHW input
    params = init_params(key, C, num_blocks)

    run = jax.jit(residual_block)
    out = jax.block_until_ready(run(x, params))

    ref = ref_residual_block(x, params)
    assert out.shape == (N, C, H, W), out.shape
    assert jnp.allclose(out, ref, atol=2e-2, rtol=2e-2), \
        f"max abs diff {float(jnp.max(jnp.abs(out - ref)))}"

    print("KERNEL_OK")
</pallas_src>

<mosaic_0001>
module attributes {stable_mosaic.version = 11 : i64} {
  func.func @_fused_block_res_kernel(%arg0: i32, %arg1: i32, %arg2: memref<1x1x16x16xf32, #tpu.memory_space<vmem>>, %arg3: memref<1x4x16x16xf32, #tpu.memory_space<vmem>>, %arg4: memref<1x1x16x16xf32, #tpu.memory_space<vmem>>, %arg5: memref<16x8xf32, #tpu.memory_space<vmem>>, %arg6: memref<1x8xf32, #tpu.memory_space<vmem>>, %arg7: memref<3x24x16xf32, #tpu.memory_space<vmem>>, %arg8: memref<1x16xf32, #tpu.memory_space<vmem>>, %arg9: memref<1x4x16x16xf32, #tpu.memory_space<vmem>>, %arg10: memref<1x4x16x16xf32, #tpu.memory_space<vmem>>) attributes {dimension_semantics = [#tpu.dimension_semantics<parallel>, #tpu.dimension_semantics<parallel>], iteration_bounds = array<i64: 2, 4>, scalar_prefetch = 0 : i64, scratch_operands = 0 : i64, tpu.core_type = #tpu.core_type<tc>, window_params = [{transform_indices = @transform_0, window_bounds = array<i64: 1, 1, 16, 16>}, {transform_indices = @transform_1, window_bounds = array<i64: 1, 4, 16, 16>}, {transform_indices = @transform_2, window_bounds = array<i64: 1, 1, 16, 16>}, {pipeline_mode = #tpu.pipeline_mode<synchronous>, transform_indices = @transform_3, window_bounds = array<i64: 16, 8>}, {pipeline_mode = #tpu.pipeline_mode<synchronous>, transform_indices = @transform_4, window_bounds = array<i64: 1, 8>}, {pipeline_mode = #tpu.pipeline_mode<synchronous>, transform_indices = @transform_5, window_bounds = array<i64: 3, 24, 16>}, {pipeline_mode = #tpu.pipeline_mode<synchronous>, transform_indices = @transform_6, window_bounds = array<i64: 1, 16>}, {transform_indices = @transform_7, window_bounds = array<i64: 1, 4, 16, 16>}, {transform_indices = @transform_8, window_bounds = array<i64: 1, 4, 16, 16>}]} {
    %c0 = arith.constant 0 : index
    %c0_0 = arith.constant 0 : index
    %0 = vector.load %arg5[%c0, %c0_0] : memref<16x8xf32, #tpu.memory_space<vmem>>, vector<16x8xf32>
    %c0_1 = arith.constant 0 : index
    %c0_2 = arith.constant 0 : index
    %1 = vector.load %arg6[%c0_1, %c0_2] : memref<1x8xf32, #tpu.memory_space<vmem>>, vector<1x8xf32>
    %c0_3 = arith.constant 0 : index
    %c0_4 = arith.constant 0 : index
    %c0_5 = arith.constant 0 : index
    %c0_6 = arith.constant 0 : index
    %2 = vector.load %arg3[%c0_3, %c0_4, %c0_5, %c0_6] : memref<1x4x16x16xf32, #tpu.memory_space<vmem>>, vector<1x4x16x16xf32>
    %3 = vector.shape_cast %2 : vector<1x4x16x16xf32> to vector<4x16x16xf32>
    %4 = vector.shape_cast %3 : vector<4x16x16xf32> to vector<64x16xf32>
    %cst = arith.constant dense<0.000000e+00> : vector<64x8xf32>
    %5 = tpu.matmul %4, %0, %cst {dimension_numbers = #tpu.dot_dimension_numbers<[1], [0], [0], [1], [0, 0, 1, 1], [], []>} : vector<64x16xf32>, vector<16x8xf32>, vector<64x8xf32> -> vector<64x8xf32>
    %6 = vector.broadcast %1 : vector<1x8xf32> to vector<64x8xf32>
    %7 = arith.addf %5, %6 : vector<64x8xf32>
    %cst_7 = arith.constant 3.000000e+01 : f32
    %8 = vector.broadcast %cst_7 : f32 to vector<64x8xf32>
    %9 = arith.minimumf %7, %8 : vector<64x8xf32>
    %10 = math.exp %9 : vector<64x8xf32>
    %cst_8 = arith.constant 1.000000e+00 : f32
    %11 = vector.broadcast %cst_8 : f32 to vector<64x8xf32>
    %12 = arith.addf %11, %10 : vector<64x8xf32>
    %cst_9 = arith.constant 1.000000e+00 : f32
    %13 = vector.broadcast %cst_9 : f32 to vector<64x8xf32>
    %14 = arith.addf %13, %10 : vector<64x8xf32>
    %15 = arith.mulf %12, %14 : vector<64x8xf32>
    %cst_10 = arith.constant 1.000000e+00 : f32
    %16 = vector.broadcast %cst_10 : f32 to vector<64x8xf32>
    %17 = arith.subf %15, %16 : vector<64x8xf32>
    %cst_11 = arith.constant 1.000000e+00 : f32
    %18 = vector.broadcast %cst_11 : f32 to vector<64x8xf32>
    %19 = arith.addf %15, %18 : vector<64x8xf32>
    %20 = arith.divf %17, %19 : vector<64x8xf32>
    %21 = arith.mulf %7, %20 : vector<64x8xf32>
    %22 = vector.shape_cast %21 : vector<64x8xf32> to vector<4x16x8xf32>
    %c0_12 = arith.constant 0 : index
    %c0_13 = arith.constant 0 : index
    %c0_14 = arith.constant 0 : index
    %c0_15 = arith.constant 0 : index
    %23 = vector.load %arg2[%c0_12, %c0_13, %c0_14, %c0_15] : memref<1x1x16x16xf32, #tpu.memory_space<vmem>>, vector<1x1x16x16xf32>
    %24 = vector.shape_cast %23 : vector<1x1x16x16xf32> to vector<1x16x16xf32>
    %25 = vector.shape_cast %24 : vector<1x16x16xf32> to vector<16x16xf32>
    %cst_16 = arith.constant dense<0.000000e+00> : vector<16x8xf32>
    %26 = tpu.matmul %25, %0, %cst_16 {dimension_numbers = #tpu.dot_dimension_numbers<[1], [0], [0], [1], [0, 0, 1, 1], [], []>} : vector<16x16xf32>, vector<16x8xf32>, vector<16x8xf32> -> vector<16x8xf32>
    %27 = vector.broadcast %1 : vector<1x8xf32> to vector<16x8xf32>
    %28 = arith.addf %26, %27 : vector<16x8xf32>
    %cst_17 = arith.constant 3.000000e+01 : f32
    %29 = vector.broadcast %cst_17 : f32 to vector<16x8xf32>
    %30 = arith.minimumf %28, %29 : vector<16x8xf32>
    %31 = math.exp %30 : vector<16x8xf32>
    %cst_18 = arith.constant 1.000000e+00 : f32
    %32 = vector.broadcast %cst_18 : f32 to vector<16x8xf32>
    %33 = arith.addf %32, %31 : vector<16x8xf32>
    %cst_19 = arith.constant 1.000000e+00 : f32
    %34 = vector.broadcast %cst_19 : f32 to vector<16x8xf32>
    %35 = arith.addf %34, %31 : vector<16x8xf32>
    %36 = arith.mulf %33, %35 : vector<16x8xf32>
    %cst_20 = arith.constant 1.000000e+00 : f32
    %37 = vector.broadcast %cst_20 : f32 to vector<16x8xf32>
    %38 = arith.subf %36, %37 : vector<16x8xf32>
    %cst_21 = arith.constant 1.000000e+00 : f32
    %39 = vector.broadcast %cst_21 : f32 to vector<16x8xf32>
    %40 = arith.addf %36, %39 : vector<16x8xf32>
    %41 = arith.divf %38, %40 : vector<16x8xf32>
    %42 = arith.mulf %28, %41 : vector<16x8xf32>
    %43 = vector.shape_cast %42 : vector<16x8xf32> to vector<1x16x8xf32>
    %c0_i32 = arith.constant 0 : i32
    %44 = arith.cmpi sgt, %arg1, %c0_i32 : i32
    %45 = arith.extui %44 : i1 to i32
    %46 = arith.sitofp %45 : i32 to f32
    %47 = vector.broadcast %46 : f32 to vector<1x16x8xf32>
    %48 = arith.mulf %43, %47 : vector<1x16x8xf32>
    %c0_22 = arith.constant 0 : index
    %c0_23 = arith.constant 0 : index
    %c0_24 = arith.constant 0 : index
    %c0_25 = arith.constant 0 : index
    %49 = vector.load %arg4[%c0_22, %c0_23, %c0_24, %c0_25] : memref<1x1x16x16xf32, #tpu.memory_space<vmem>>, vector<1x1x16x16xf32>
    %50 = vector.shape_cast %49 : vector<1x1x16x16xf32> to vector<1x16x16xf32>
    %51 = vector.shape_cast %50 : vector<1x16x16xf32> to vector<16x16xf32>
    %cst_26 = arith.constant dense<0.000000e+00> : vector<16x8xf32>
    %52 = tpu.matmul %51, %0, %cst_26 {dimension_numbers = #tpu.dot_dimension_numbers<[1], [0], [0], [1], [0, 0, 1, 1], [], []>} : vector<16x16xf32>, vector<16x8xf32>, vector<16x8xf32> -> vector<16x8xf32>
    %53 = vector.broadcast %1 : vector<1x8xf32> to vector<16x8xf32>
    %54 = arith.addf %52, %53 : vector<16x8xf32>
    %cst_27 = arith.constant 3.000000e+01 : f32
    %55 = vector.broadcast %cst_27 : f32 to vector<16x8xf32>
    %56 = arith.minimumf %54, %55 : vector<16x8xf32>
    %57 = math.exp %56 : vector<16x8xf32>
    %cst_28 = arith.constant 1.000000e+00 : f32
    %58 = vector.broadcast %cst_28 : f32 to vector<16x8xf32>
    %59 = arith.addf %58, %57 : vector<16x8xf32>
    %cst_29 = arith.constant 1.000000e+00 : f32
    %60 = vector.broadcast %cst_29 : f32 to vector<16x8xf32>
    %61 = arith.addf %60, %57 : vector<16x8xf32>
    %62 = arith.mulf %59, %61 : vector<16x8xf32>
    %cst_30 = arith.constant 1.000000e+00 : f32
    %63 = vector.broadcast %cst_30 : f32 to vector<16x8xf32>
    %64 = arith.subf %62, %63 : vector<16x8xf32>
    %cst_31 = arith.constant 1.000000e+00 : f32
    %65 = vector.broadcast %cst_31 : f32 to vector<16x8xf32>
    %66 = arith.addf %62, %65 : vector<16x8xf32>
    %67 = arith.divf %64, %66 : vector<16x8xf32>
    %68 = arith.mulf %54, %67 : vector<16x8xf32>
    %69 = vector.shape_cast %68 : vector<16x8xf32> to vector<1x16x8xf32>
    %c3_i32 = arith.constant 3 : i32
    %70 = arith.cmpi slt, %arg1, %c3_i32 : i32
    %71 = arith.extui %70 : i1 to i32
    %72 = arith.sitofp %71 : i32 to f32
    %73 = vector.broadcast %72 : f32 to vector<1x16x8xf32>
    %74 = arith.mulf %69, %73 : vector<1x16x8xf32>
    %75 = tpu.concatenate %48, %22, %74 in 0 : vector<1x16x8xf32>, vector<4x16x8xf32>, vector<1x16x8xf32> -> vector<6x16x8xf32>
    %cst_32 = arith.constant 0.000000e+00 : f32
    %76 = vector.broadcast %cst_32 : f32 to vector<6x1x8xf32>
    %77 = vector.extract_strided_slice %75 {offsets = [0, 0, 0], sizes = [6, 15, 8], strides = [1, 1, 1]} : vector<6x16x8xf32> to vector<6x15x8xf32>
    %78 = tpu.concatenate %76, %77 in 1 : vector<6x1x8xf32>, vector<6x15x8xf32> -> vector<6x16x8xf32>
    %cst_33 = arith.constant 0.000000e+00 : f32
    %79 = vector.broadcast %cst_33 : f32 to vector<6x1x8xf32>
    %80 = vector.extract_strided_slice %75 {offsets = [0, 1, 0], sizes = [6, 15, 8], strides = [1, 1, 1]} : vector<6x16x8xf32> to vector<6x15x8xf32>
    %81 = tpu.concatenate %80, %79 in 1 : vector<6x15x8xf32>, vector<6x1x8xf32> -> vector<6x16x8xf32>
    %82 = tpu.concatenate %78, %75, %81 in 2 : vector<6x16x8xf32>, vector<6x16x8xf32>, vector<6x16x8xf32> -> vector<6x16x24xf32>
    %83 = vector.extract_strided_slice %82 {offsets = [0, 0, 0], sizes = [4, 16, 24], strides = [1, 1, 1]} : vector<6x16x24xf32> to vector<4x16x24xf32>
    %84 = vector.shape_cast %83 : vector<4x16x24xf32> to vector<64x24xf32>
    %c0_34 = arith.constant 0 : index
    %c0_35 = arith.constant 0 : index
    %c0_36 = arith.constant 0 : index
    %85 = vector.load %arg7[%c0_34, %c0_35, %c0_36] : memref<3x24x16xf32, #tpu.memory_space<vmem>>, vector<1x24x16xf32>
    %86 = vector.shape_cast %85 : vector<1x24x16xf32> to vector<24x16xf32>
    %cst_37 = arith.constant dense<0.000000e+00> : vector<64x16xf32>
    %87 = tpu.matmul %84, %86, %cst_37 {dimension_numbers = #tpu.dot_dimension_numbers<[1], [0], [0], [1], [0, 0, 1, 1], [], []>} : vector<64x24xf32>, vector<24x16xf32>, vector<64x16xf32> -> vector<64x16xf32>
    %88 = vector.extract_strided_slice %82 {offsets = [1, 0, 0], sizes = [4, 16, 24], strides = [1, 1, 1]} : vector<6x16x24xf32> to vector<4x16x24xf32>
    %89 = vector.shape_cast %88 : vector<4x16x24xf32> to vector<64x24xf32>
    %c1 = arith.constant 1 : index
    %c0_38 = arith.constant 0 : index
    %c0_39 = arith.constant 0 : index
    %90 = vector.load %arg7[%c1, %c0_38, %c0_39] : memref<3x24x16xf32, #tpu.memory_space<vmem>>, vector<1x24x16xf32>
    %91 = vector.shape_cast %90 : vector<1x24x16xf32> to vector<24x16xf32>
    %cst_40 = arith.constant dense<0.000000e+00> : vector<64x16xf32>
    %92 = tpu.matmul %89, %91, %cst_40 {dimension_numbers = #tpu.dot_dimension_numbers<[1], [0], [0], [1], [0, 0, 1, 1], [], []>} : vector<64x24xf32>, vector<24x16xf32>, vector<64x16xf32> -> vector<64x16xf32>
    %93 = arith.addf %87, %92 : vector<64x16xf32>
    %94 = vector.extract_strided_slice %82 {offsets = [2, 0, 0], sizes = [4, 16, 24], strides = [1, 1, 1]} : vector<6x16x24xf32> to vector<4x16x24xf32>
    %95 = vector.shape_cast %94 : vector<4x16x24xf32> to vector<64x24xf32>
    %c2 = arith.constant 2 : index
    %c0_41 = arith.constant 0 : index
    %c0_42 = arith.constant 0 : index
    %96 = vector.load %arg7[%c2, %c0_41, %c0_42] : memref<3x24x16xf32, #tpu.memory_space<vmem>>, vector<1x24x16xf32>
    %97 = vector.shape_cast %96 : vector<1x24x16xf32> to vector<24x16xf32>
    %cst_43 = arith.constant dense<0.000000e+00> : vector<64x16xf32>
    %98 = tpu.matmul %95, %97, %cst_43 {dimension_numbers = #tpu.dot_dimension_numbers<[1], [0], [0], [1], [0, 0, 1, 1], [], []>} : vector<64x24xf32>, vector<24x16xf32>, vector<64x16xf32> -> vector<64x16xf32>
    %99 = arith.addf %93, %98 : vector<64x16xf32>
    %c0_44 = arith.constant 0 : index
    %c0_45 = arith.constant 0 : index
    %100 = vector.load %arg8[%c0_44, %c0_45] : memref<1x16xf32, #tpu.memory_space<vmem>>, vector<1x16xf32>
    %101 = vector.broadcast %100 : vector<1x16xf32> to vector<64x16xf32>
    %102 = arith.addf %99, %101 : vector<64x16xf32>
    %cst_46 = arith.constant 3.000000e+01 : f32
    %103 = vector.broadcast %cst_46 : f32 to vector<64x16xf32>
    %104 = arith.minimumf %102, %103 : vector<64x16xf32>
    %105 = math.exp %104 : vector<64x16xf32>
    %cst_47 = arith.constant 1.000000e+00 : f32
    %106 = vector.broadcast %cst_47 : f32 to vector<64x16xf32>
    %107 = arith.addf %106, %105 : vector<64x16xf32>
    %cst_48 = arith.constant 1.000000e+00 : f32
    %108 = vector.broadcast %cst_48 : f32 to vector<64x16xf32>
    %109 = arith.addf %108, %105 : vector<64x16xf32>
    %110 = arith.mulf %107, %109 : vector<64x16xf32>
    %cst_49 = arith.constant 1.000000e+00 : f32
    %111 = vector.broadcast %cst_49 : f32 to vector<64x16xf32>
    %112 = arith.subf %110, %111 : vector<64x16xf32>
    %cst_50 = arith.constant 1.000000e+00 : f32
    %113 = vector.broadcast %cst_50 : f32 to vector<64x16xf32>
    %114 = arith.addf %110, %113 : vector<64x16xf32>
    %115 = arith.divf %112, %114 : vector<64x16xf32>
    %116 = arith.mulf %102, %115 : vector<64x16xf32>
    %117 = vector.shape_cast %116 : vector<64x16xf32> to vector<4x16x16xf32>
    %c0_51 = arith.constant 0 : index
    %c0_52 = arith.constant 0 : index
    %c0_53 = arith.constant 0 : index
    %c0_54 = arith.constant 0 : index
    %118 = vector.load %arg9[%c0_51, %c0_52, %c0_53, %c0_54] : memref<1x4x16x16xf32, #tpu.memory_space<vmem>>, vector<1x4x16x16xf32>
    %119 = vector.shape_cast %118 : vector<1x4x16x16xf32> to vector<4x16x16xf32>
    %120 = arith.addf %117, %119 : vector<4x16x16xf32>
    %c0_55 = arith.constant 0 : index
    %c0_56 = arith.constant 0 : index
    %c0_57 = arith.constant 0 : index
    %c0_58 = arith.constant 0 : index
    %121 = vector.load %arg10[%c0_55, %c0_56, %c0_57, %c0_58] : memref<1x4x16x16xf32, #tpu.memory_space<vmem>>, vector<1x4x16x16xf32>
    %122 = vector.shape_cast %121 : vector<1x4x16x16xf32> to vector<4x16x16xf32>
    %123 = vector.shape_cast %120 : vector<4x16x16xf32> to vector<1x4x16x16xf32>
    tpu.vector_store %arg10[%c0_55, %c0_56, %c0_57, %c0_58], %123 {strides = array<i32>} : memref<1x4x16x16xf32, #tpu.memory_space<vmem>>, vector<1x4x16x16xf32>,
    return
  }
  func.func @transform_0(%arg0: i32, %arg1: i32) -> (i32, i32, i32, i32) {
    %c4_i32 = arith.constant 4 : i32
    %0 = arith.muli %arg1, %c4_i32 : i32
    %c1_i32 = arith.constant 1 : i32
    %1 = arith.subi %0, %c1_i32 : i32
    %c0_i32 = arith.constant 0 : i32
    %2 = arith.maxsi %1, %c0_i32 : i32
    %c0_i32_0 = arith.constant 0 : i32
    %c0_i32_1 = arith.constant 0 : i32
    %c0_i32_2 = arith.constant 0 : i32
    return %arg0, %2, %c0_i32_0, %c0_i32_1 : i32, i32, i32, i32
  }
  func.func @transform_1(%arg0: i32, %arg1: i32) -> (i32, i32, i32, i32) {
    %c0_i32 = arith.constant 0 : i32
    %c0_i32_0 = arith.constant 0 : i32
    %c0_i32_1 = arith.constant 0 : i32
    return %arg0, %arg1, %c0_i32, %c0_i32_0 : i32, i32, i32, i32
  }
  func.func @transform_2(%arg0: i32, %arg1: i32) -> (i32, i32, i32, i32) {
    %c1_i32 = arith.constant 1 : i32
    %0 = arith.addi %arg1, %c1_i32 : i32
    %c4_i32 = arith.constant 4 : i32
    %1 = arith.muli %0, %c4_i32 : i32
    %c15_i32 = arith.constant 15 : i32
    %2 = arith.minsi %1, %c15_i32 : i32
    %c0_i32 = arith.constant 0 : i32
    %c0_i32_0 = arith.constant 0 : i32
    %c0_i32_1 = arith.constant 0 : i32
    return %arg0, %2, %c0_i32, %c0_i32_0 : i32, i32, i32, i32
  }
  func.func @transform_3(%arg0: i32, %arg1: i32) -> (i32, i32) {
    %c0_i32 = arith.constant 0 : i32
    %c0_i32_0 = arith.constant 0 : i32
    %c0_i32_1 = arith.constant 0 : i32
    return %c0_i32, %c0_i32_0 : i32, i32
  }
  func.func @transform_4(%arg0: i32, %arg1: i32) -> (i32, i32) {
    %c0_i32 = arith.constant 0 : i32
    %c0_i32_0 = arith.constant 0 : i32
    %c0_i32_1 = arith.constant 0 : i32
    return %c0_i32, %c0_i32_0 : i32, i32
  }
  func.func @transform_5(%arg0: i32, %arg1: i32) -> (i32, i32, i32) {
    %c0_i32 = arith.constant 0 : i32
    %c0_i32_0 = arith.constant 0 : i32
    %c0_i32_1 = arith.constant 0 : i32
    %c0_i32_2 = arith.constant 0 : i32
    return %c0_i32, %c0_i32_0, %c0_i32_1 : i32, i32, i32
  }
  func.func @transform_6(%arg0: i32, %arg1: i32) -> (i32, i32) {
    %c0_i32 = arith.constant 0 : i32
    %c0_i32_0 = arith.constant 0 : i32
    %c0_i32_1 = arith.constant 0 : i32
    return %c0_i32, %c0_i32_0 : i32, i32
  }
  func.func @transform_7(%arg0: i32, %arg1: i32) -> (i32, i32, i32, i32) {
    %c0_i32 = arith.constant 0 : i32
    %c0_i32_0 = arith.constant 0 : i32
    %c0_i32_1 = arith.constant 0 : i32
    return %arg0, %arg1, %c0_i32, %c0_i32_0 : i32, i32, i32, i32
  }
  func.func @transform_8(%arg0: i32, %arg1: i32) -> (i32, i32, i32, i32) {
    %c0_i32 = arith.constant 0 : i32
    %c0_i32_0 = arith.constant 0 : i32
    %c0_i32_1 = arith.constant 0 : i32
    return %arg0, %arg1, %c0_i32, %c0_i32_0 : i32, i32, i32, i32
  }
}

module attributes {stable_mosaic.version = 11 : i64} {
  func.func @_fused_block_kernel(%arg0: i32, %arg1: i32, %arg2: memref<1x1x16x16xf32, #tpu.memory_space<vmem>>, %arg3: memref<1x4x16x16xf32, #tpu.memory_space<vmem>>, %arg4: memref<1x1x16x16xf32, #tpu.memory_space<vmem>>, %arg5: memref<16x8xf32, #tpu.memory_space<vmem>>, %arg6: memref<1x8xf32, #tpu.memory_space<vmem>>, %arg7: memref<3x24x16xf32, #tpu.memory_space<vmem>>, %arg8: memref<1x16xf32, #tpu.memory_space<vmem>>, %arg9: memref<1x4x16x16xf32, #tpu.memory_space<vmem>>) attributes {dimension_semantics = [#tpu.dimension_semantics<parallel>, #tpu.dimension_semantics<parallel>], iteration_bounds = array<i64: 2, 4>, scalar_prefetch = 0 : i64, scratch_operands = 0 : i64, tpu.core_type = #tpu.core_type<tc>, window_params = [{transform_indices = @transform_0, window_bounds = array<i64: 1, 1, 16, 16>}, {transform_indices = @transform_1, window_bounds = array<i64: 1, 4, 16, 16>}, {transform_indices = @transform_2, window_bounds = array<i64: 1, 1, 16, 16>}, {pipeline_mode = #tpu.pipeline_mode<synchronous>, transform_indices = @transform_3, window_bounds = array<i64: 16, 8>}, {pipeline_mode = #tpu.pipeline_mode<synchronous>, transform_indices = @transform_4, window_bounds = array<i64: 1, 8>}, {pipeline_mode = #tpu.pipeline_mode<synchronous>, transform_indices = @transform_5, window_bounds = array<i64: 3, 24, 16>}, {pipeline_mode = #tpu.pipeline_mode<synchronous>, transform_indices = @transform_6, window_bounds = array<i64: 1, 16>}, {transform_indices = @transform_7, window_bounds = array<i64: 1, 4, 16, 16>}]} {
    %c0 = arith.constant 0 : index
    %c0_0 = arith.constant 0 : index
    %0 = vector.load %arg5[%c0, %c0_0] : memref<16x8xf32, #tpu.memory_space<vmem>>, vector<16x8xf32>
    %c0_1 = arith.constant 0 : index
    %c0_2 = arith.constant 0 : index
    %1 = vector.load %arg6[%c0_1, %c0_2] : memref<1x8xf32, #tpu.memory_space<vmem>>, vector<1x8xf32>
    %c0_3 = arith.constant 0 : index
    %c0_4 = arith.constant 0 : index
    %c0_5 = arith.constant 0 : index
    %c0_6 = arith.constant 0 : index
    %2 = vector.load %arg3[%c0_3, %c0_4, %c0_5, %c0_6] : memref<1x4x16x16xf32, #tpu.memory_space<vmem>>, vector<1x4x16x16xf32>
    %3 = vector.shape_cast %2 : vector<1x4x16x16xf32> to vector<4x16x16xf32>
    %4 = vector.shape_cast %3 : vector<4x16x16xf32> to vector<64x16xf32>
    %cst = arith.constant dense<0.000000e+00> : vector<64x8xf32>
    %5 = tpu.matmul %4, %0, %cst {dimension_numbers = #tpu.dot_dimension_numbers<[1], [0], [0], [1], [0, 0, 1, 1], [], []>} : vector<64x16xf32>, vector<16x8xf32>, vector<64x8xf32> -> vector<64x8xf32>
    %6 = vector.broadcast %1 : vector<1x8xf32> to vector<64x8xf32>
    %7 = arith.addf %5, %6 : vector<64x8xf32>
    %cst_7 = arith.constant 3.000000e+01 : f32
    %8 = vector.broadcast %cst_7 : f32 to vector<64x8xf32>
    %9 = arith.minimumf %7, %8 : vector<64x8xf32>
    %10 = math.exp %9 : vector<64x8xf32>
    %cst_8 = arith.constant 1.000000e+00 : f32
    %11 = vector.broadcast %cst_8 : f32 to vector<64x8xf32>
    %12 = arith.addf %11, %10 : vector<64x8xf32>
    %cst_9 = arith.constant 1.000000e+00 : f32
    %13 = vector.broadcast %cst_9 : f32 to vector<64x8xf32>
    %14 = arith.addf %13, %10 : vector<64x8xf32>
    %15 = arith.mulf %12, %14 : vector<64x8xf32>
    %cst_10 = arith.constant 1.000000e+00 : f32
    %16 = vector.broadcast %cst_10 : f32 to vector<64x8xf32>
    %17 = arith.subf %15, %16 : vector<64x8xf32>
    %cst_11 = arith.constant 1.000000e+00 : f32
    %18 = vector.broadcast %cst_11 : f32 to vector<64x8xf32>
    %19 = arith.addf %15, %18 : vector<64x8xf32>
    %20 = arith.divf %17, %19 : vector<64x8xf32>
    %21 = arith.mulf %7, %20 : vector<64x8xf32>
    %22 = vector.shape_cast %21 : vector<64x8xf32> to vector<4x16x8xf32>
    %c0_12 = arith.constant 0 : index
    %c0_13 = arith.constant 0 : index
    %c0_14 = arith.constant 0 : index
    %c0_15 = arith.constant 0 : index
    %23 = vector.load %arg2[%c0_12, %c0_13, %c0_14, %c0_15] : memref<1x1x16x16xf32, #tpu.memory_space<vmem>>, vector<1x1x16x16xf32>
    %24 = vector.shape_cast %23 : vector<1x1x16x16xf32> to vector<1x16x16xf32>
    %25 = vector.shape_cast %24 : vector<1x16x16xf32> to vector<16x16xf32>
    %cst_16 = arith.constant dense<0.000000e+00> : vector<16x8xf32>
    %26 = tpu.matmul %25, %0, %cst_16 {dimension_numbers = #tpu.dot_dimension_numbers<[1], [0], [0], [1], [0, 0, 1, 1], [], []>} : vector<16x16xf32>, vector<16x8xf32>, vector<16x8xf32> -> vector<16x8xf32>
    %27 = vector.broadcast %1 : vector<1x8xf32> to vector<16x8xf32>
    %28 = arith.addf %26, %27 : vector<16x8xf32>
    %cst_17 = arith.constant 3.000000e+01 : f32
    %29 = vector.broadcast %cst_17 : f32 to vector<16x8xf32>
    %30 = arith.minimumf %28, %29 : vector<16x8xf32>
    %31 = math.exp %30 : vector<16x8xf32>
    %cst_18 = arith.constant 1.000000e+00 : f32
    %32 = vector.broadcast %cst_18 : f32 to vector<16x8xf32>
    %33 = arith.addf %32, %31 : vector<16x8xf32>
    %cst_19 = arith.constant 1.000000e+00 : f32
    %34 = vector.broadcast %cst_19 : f32 to vector<16x8xf32>
    %35 = arith.addf %34, %31 : vector<16x8xf32>
    %36 = arith.mulf %33, %35 : vector<16x8xf32>
    %cst_20 = arith.constant 1.000000e+00 : f32
    %37 = vector.broadcast %cst_20 : f32 to vector<16x8xf32>
    %38 = arith.subf %36, %37 : vector<16x8xf32>
    %cst_21 = arith.constant 1.000000e+00 : f32
    %39 = vector.broadcast %cst_21 : f32 to vector<16x8xf32>
    %40 = arith.addf %36, %39 : vector<16x8xf32>
    %41 = arith.divf %38, %40 : vector<16x8xf32>
    %42 = arith.mulf %28, %41 : vector<16x8xf32>
    %43 = vector.shape_cast %42 : vector<16x8xf32> to vector<1x16x8xf32>
    %c0_i32 = arith.constant 0 : i32
    %44 = arith.cmpi sgt, %arg1, %c0_i32 : i32
    %45 = arith.extui %44 : i1 to i32
    %46 = arith.sitofp %45 : i32 to f32
    %47 = vector.broadcast %46 : f32 to vector<1x16x8xf32>
    %48 = arith.mulf %43, %47 : vector<1x16x8xf32>
    %c0_22 = arith.constant 0 : index
    %c0_23 = arith.constant 0 : index
    %c0_24 = arith.constant 0 : index
    %c0_25 = arith.constant 0 : index
    %49 = vector.load %arg4[%c0_22, %c0_23, %c0_24, %c0_25] : memref<1x1x16x16xf32, #tpu.memory_space<vmem>>, vector<1x1x16x16xf32>
    %50 = vector.shape_cast %49 : vector<1x1x16x16xf32> to vector<1x16x16xf32>
    %51 = vector.shape_cast %50 : vector<1x16x16xf32> to vector<16x16xf32>
    %cst_26 = arith.constant dense<0.000000e+00> : vector<16x8xf32>
    %52 = tpu.matmul %51, %0, %cst_26 {dimension_numbers = #tpu.dot_dimension_numbers<[1], [0], [0], [1], [0, 0, 1, 1], [], []>} : vector<16x16xf32>, vector<16x8xf32>, vector<16x8xf32> -> vector<16x8xf32>
    %53 = vector.broadcast %1 : vector<1x8xf32> to vector<16x8xf32>
    %54 = arith.addf %52, %53 : vector<16x8xf32>
    %cst_27 = arith.constant 3.000000e+01 : f32
    %55 = vector.broadcast %cst_27 : f32 to vector<16x8xf32>
    %56 = arith.minimumf %54, %55 : vector<16x8xf32>
    %57 = math.exp %56 : vector<16x8xf32>
    %cst_28 = arith.constant 1.000000e+00 : f32
    %58 = vector.broadcast %cst_28 : f32 to vector<16x8xf32>
    %59 = arith.addf %58, %57 : vector<16x8xf32>
    %cst_29 = arith.constant 1.000000e+00 : f32
    %60 = vector.broadcast %cst_29 : f32 to vector<16x8xf32>
    %61 = arith.addf %60, %57 : vector<16x8xf32>
    %62 = arith.mulf %59, %61 : vector<16x8xf32>
    %cst_30 = arith.constant 1.000000e+00 : f32
    %63 = vector.broadcast %cst_30 : f32 to vector<16x8xf32>
    %64 = arith.subf %62, %63 : vector<16x8xf32>
    %cst_31 = arith.constant 1.000000e+00 : f32
    %65 = vector.broadcast %cst_31 : f32 to vector<16x8xf32>
    %66 = arith.addf %62, %65 : vector<16x8xf32>
    %67 = arith.divf %64, %66 : vector<16x8xf32>
    %68 = arith.mulf %54, %67 : vector<16x8xf32>
    %69 = vector.shape_cast %68 : vector<16x8xf32> to vector<1x16x8xf32>
    %c3_i32 = arith.constant 3 : i32
    %70 = arith.cmpi slt, %arg1, %c3_i32 : i32
    %71 = arith.extui %70 : i1 to i32
    %72 = arith.sitofp %71 : i32 to f32
    %73 = vector.broadcast %72 : f32 to vector<1x16x8xf32>
    %74 = arith.mulf %69, %73 : vector<1x16x8xf32>
    %75 = tpu.concatenate %48, %22, %74 in 0 : vector<1x16x8xf32>, vector<4x16x8xf32>, vector<1x16x8xf32> -> vector<6x16x8xf32>
    %cst_32 = arith.constant 0.000000e+00 : f32
    %76 = vector.broadcast %cst_32 : f32 to vector<6x1x8xf32>
    %77 = vector.extract_strided_slice %75 {offsets = [0, 0, 0], sizes = [6, 15, 8], strides = [1, 1, 1]} : vector<6x16x8xf32> to vector<6x15x8xf32>
    %78 = tpu.concatenate %76, %77 in 1 : vector<6x1x8xf32>, vector<6x15x8xf32> -> vector<6x16x8xf32>
    %cst_33 = arith.constant 0.000000e+00 : f32
    %79 = vector.broadcast %cst_33 : f32 to vector<6x1x8xf32>
    %80 = vector.extract_strided_slice %75 {offsets = [0, 1, 0], sizes = [6, 15, 8], strides = [1, 1, 1]} : vector<6x16x8xf32> to vector<6x15x8xf32>
    %81 = tpu.concatenate %80, %79 in 1 : vector<6x15x8xf32>, vector<6x1x8xf32> -> vector<6x16x8xf32>
    %82 = tpu.concatenate %78, %75, %81 in 2 : vector<6x16x8xf32>, vector<6x16x8xf32>, vector<6x16x8xf32> -> vector<6x16x24xf32>
    %83 = vector.extract_strided_slice %82 {offsets = [0, 0, 0], sizes = [4, 16, 24], strides = [1, 1, 1]} : vector<6x16x24xf32> to vector<4x16x24xf32>
    %84 = vector.shape_cast %83 : vector<4x16x24xf32> to vector<64x24xf32>
    %c0_34 = arith.constant 0 : index
    %c0_35 = arith.constant 0 : index
    %c0_36 = arith.constant 0 : index
    %85 = vector.load %arg7[%c0_34, %c0_35, %c0_36] : memref<3x24x16xf32, #tpu.memory_space<vmem>>, vector<1x24x16xf32>
    %86 = vector.shape_cast %85 : vector<1x24x16xf32> to vector<24x16xf32>
    %cst_37 = arith.constant dense<0.000000e+00> : vector<64x16xf32>
    %87 = tpu.matmul %84, %86, %cst_37 {dimension_numbers = #tpu.dot_dimension_numbers<[1], [0], [0], [1], [0, 0, 1, 1], [], []>} : vector<64x24xf32>, vector<24x16xf32>, vector<64x16xf32> -> vector<64x16xf32>
    %88 = vector.extract_strided_slice %82 {offsets = [1, 0, 0], sizes = [4, 16, 24], strides = [1, 1, 1]} : vector<6x16x24xf32> to vector<4x16x24xf32>
    %89 = vector.shape_cast %88 : vector<4x16x24xf32> to vector<64x24xf32>
    %c1 = arith.constant 1 : index
    %c0_38 = arith.constant 0 : index
    %c0_39 = arith.constant 0 : index
    %90 = vector.load %arg7[%c1, %c0_38, %c0_39] : memref<3x24x16xf32, #tpu.memory_space<vmem>>, vector<1x24x16xf32>
    %91 = vector.shape_cast %90 : vector<1x24x16xf32> to vector<24x16xf32>
    %cst_40 = arith.constant dense<0.000000e+00> : vector<64x16xf32>
    %92 = tpu.matmul %89, %91, %cst_40 {dimension_numbers = #tpu.dot_dimension_numbers<[1], [0], [0], [1], [0, 0, 1, 1], [], []>} : vector<64x24xf32>, vector<24x16xf32>, vector<64x16xf32> -> vector<64x16xf32>
    %93 = arith.addf %87, %92 : vector<64x16xf32>
    %94 = vector.extract_strided_slice %82 {offsets = [2, 0, 0], sizes = [4, 16, 24], strides = [1, 1, 1]} : vector<6x16x24xf32> to vector<4x16x24xf32>
    %95 = vector.shape_cast %94 : vector<4x16x24xf32> to vector<64x24xf32>
    %c2 = arith.constant 2 : index
    %c0_41 = arith.constant 0 : index
    %c0_42 = arith.constant 0 : index
    %96 = vector.load %arg7[%c2, %c0_41, %c0_42] : memref<3x24x16xf32, #tpu.memory_space<vmem>>, vector<1x24x16xf32>
    %97 = vector.shape_cast %96 : vector<1x24x16xf32> to vector<24x16xf32>
    %cst_43 = arith.constant dense<0.000000e+00> : vector<64x16xf32>
    %98 = tpu.matmul %95, %97, %cst_43 {dimension_numbers = #tpu.dot_dimension_numbers<[1], [0], [0], [1], [0, 0, 1, 1], [], []>} : vector<64x24xf32>, vector<24x16xf32>, vector<64x16xf32> -> vector<64x16xf32>
    %99 = arith.addf %93, %98 : vector<64x16xf32>
    %c0_44 = arith.constant 0 : index
    %c0_45 = arith.constant 0 : index
    %100 = vector.load %arg8[%c0_44, %c0_45] : memref<1x16xf32, #tpu.memory_space<vmem>>, vector<1x16xf32>
    %101 = vector.broadcast %100 : vector<1x16xf32> to vector<64x16xf32>
    %102 = arith.addf %99, %101 : vector<64x16xf32>
    %cst_46 = arith.constant 3.000000e+01 : f32
    %103 = vector.broadcast %cst_46 : f32 to vector<64x16xf32>
    %104 = arith.minimumf %102, %103 : vector<64x16xf32>
    %105 = math.exp %104 : vector<64x16xf32>
    %cst_47 = arith.constant 1.000000e+00 : f32
    %106 = vector.broadcast %cst_47 : f32 to vector<64x16xf32>
    %107 = arith.addf %106, %105 : vector<64x16xf32>
    %cst_48 = arith.constant 1.000000e+00 : f32
    %108 = vector.broadcast %cst_48 : f32 to vector<64x16xf32>
    %109 = arith.addf %108, %105 : vector<64x16xf32>
    %110 = arith.mulf %107, %109 : vector<64x16xf32>
    %cst_49 = arith.constant 1.000000e+00 : f32
    %111 = vector.broadcast %cst_49 : f32 to vector<64x16xf32>
    %112 = arith.subf %110, %111 : vector<64x16xf32>
    %cst_50 = arith.constant 1.000000e+00 : f32
    %113 = vector.broadcast %cst_50 : f32 to vector<64x16xf32>
    %114 = arith.addf %110, %113 : vector<64x16xf32>
    %115 = arith.divf %112, %114 : vector<64x16xf32>
    %116 = arith.mulf %102, %115 : vector<64x16xf32>
    %117 = vector.shape_cast %116 : vector<64x16xf32> to vector<4x16x16xf32>
    %c0_51 = arith.constant 0 : index
    %c0_52 = arith.constant 0 : index
    %c0_53 = arith.constant 0 : index
    %c0_54 = arith.constant 0 : index
    %118 = vector.load %arg9[%c0_51, %c0_52, %c0_53, %c0_54] : memref<1x4x16x16xf32, #tpu.memory_space<vmem>>, vector<1x4x16x16xf32>
    %119 = vector.shape_cast %118 : vector<1x4x16x16xf32> to vector<4x16x16xf32>
    %120 = vector.shape_cast %117 : vector<4x16x16xf32> to vector<1x4x16x16xf32>
    tpu.vector_store %arg9[%c0_51, %c0_52, %c0_53, %c0_54], %120 {strides = array<i32>} : memref<1x4x16x16xf32, #tpu.memory_space<vmem>>, vector<1x4x16x16xf32>,
    return
  }
  func.func @transform_0(%arg0: i32, %arg1: i32) -> (i32, i32, i32, i32) {
    %c4_i32 = arith.constant 4 : i32
    %0 = arith.muli %arg1, %c4_i32 : i32
    %c1_i32 = arith.constant 1 : i32
    %1 = arith.subi %0, %c1_i32 : i32
    %c0_i32 = arith.constant 0 : i32
    %2 = arith.maxsi %1, %c0_i32 : i32
    %c0_i32_0 = arith.constant 0 : i32
    %c0_i32_1 = arith.constant 0 : i32
    %c0_i32_2 = arith.constant 0 : i32
    return %arg0, %2, %c0_i32_0, %c0_i32_1 : i32, i32, i32, i32
  }
  func.func @transform_1(%arg0: i32, %arg1: i32) -> (i32, i32, i32, i32) {
    %c0_i32 = arith.constant 0 : i32
    %c0_i32_0 = arith.constant 0 : i32
    %c0_i32_1 = arith.constant 0 : i32
    return %arg0, %arg1, %c0_i32, %c0_i32_0 : i32, i32, i32, i32
  }
  func.func @transform_2(%arg0: i32, %arg1: i32) -> (i32, i32, i32, i32) {
    %c1_i32 = arith.constant 1 : i32
    %0 = arith.addi %arg1, %c1_i32 : i32
    %c4_i32 = arith.constant 4 : i32
    %1 = arith.muli %0, %c4_i32 : i32
    %c15_i32 = arith.constant 15 : i32
    %2 = arith.minsi %1, %c15_i32 : i32
    %c0_i32 = arith.constant 0 : i32
    %c0_i32_0 = arith.constant 0 : i32
    %c0_i32_1 = arith.constant 0 : i32
    return %arg0, %2, %c0_i32, %c0_i32_0 : i32, i32, i32, i32
  }
  func.func @transform_3(%arg0: i32, %arg1: i32) -> (i32, i32) {
    %c0_i32 = arith.constant 0 : i32
    %c0_i32_0 = arith.constant 0 : i32
    %c0_i32_1 = arith.constant 0 : i32
    return %c0_i32, %c0_i32_0 : i32, i32
  }
  func.func @transform_4(%arg0: i32, %arg1: i32) -> (i32, i32) {
    %c0_i32 = arith.constant 0 : i32
    %c0_i32_0 = arith.constant 0 : i32
    %c0_i32_1 = arith.constant 0 : i32
    return %c0_i32, %c0_i32_0 : i32, i32
  }
  func.func @transform_5(%arg0: i32, %arg1: i32) -> (i32, i32, i32) {
    %c0_i32 = arith.constant 0 : i32
    %c0_i32_0 = arith.constant 0 : i32
    %c0_i32_1 = arith.constant 0 : i32
    %c0_i32_2 = arith.constant 0 : i32
    return %c0_i32, %c0_i32_0, %c0_i32_1 : i32, i32, i32
  }
  func.func @transform_6(%arg0: i32, %arg1: i32) -> (i32, i32) {
    %c0_i32 = arith.constant 0 : i32
    %c0_i32_0 = arith.constant 0 : i32
    %c0_i32_1 = arith.constant 0 : i32
    return %c0_i32, %c0_i32_0 : i32, i32
  }
  func.func @transform_7(%arg0: i32, %arg1: i32) -> (i32, i32, i32, i32) {
    %c0_i32 = arith.constant 0 : i32
    %c0_i32_0 = arith.constant 0 : i32
    %c0_i32_1 = arith.constant 0 : i32
    return %arg0, %arg1, %c0_i32, %c0_i32_0 : i32, i32, i32, i32
  }
}

</mosaic_0001>

<bundles_post_ra>
// kernel: residual_block.2
= control target key start
LH: loop header
LB: loop body
LE: loop exit
PB: predicated region body
PF: predicated region fallthrough
CT: control target
= control target key end

     0   :  { %s2179_s24 = smov 0   ;;  %s2181_s25 = smov 0   ;;  %s2641_s0 = inlined_call_operand.vmem [shape: f32[2,16,16,16], index: 0, kind: input, shape index: {}, may-alias: {0,1,2}]   ;;  %s2642_s1 = inlined_call_operand.vmem [shape: f32[2,16,16,16], index: 1, kind: input, shape index: {}, may-alias: {0,1,2}]   ;;  %s2643_s2 = inlined_call_operand.vmem [shape: f32[2,16,16,16], index: 2, kind: input, shape index: {}, may-alias: {0,1,2}]   ;;  %s2644_s3 = inlined_call_operand.vmem [shape: f32[16,8], index: 3, kind: input, shape index: {}]   ;;  %s2645_s4 = inlined_call_operand.vmem [shape: f32[1,8], index: 4, kind: input, shape index: {}]   ;;  %s2646_s5 = inlined_call_operand.vmem [shape: f32[3,24,16], index: 5, kind: input, shape index: {}]   ;;  %s2647_s6 = inlined_call_operand.vmem [shape: f32[1,16], index: 6, kind: input, shape index: {}]   ;;  %s2648_s7 = inlined_call_operand.vmem [shape: f32[2,16,16,16], index: 7, kind: output, shape index: {}]  }
   0x1   :  { %s2183_s26 = smov 0   ;;  %s2185_s27 = smov 0  }
   0x2   :  { %s2187_s28 = smov 0  }
   0x3 LB: > { %s26_s29 = sadd.s32 1, %s2127_s26  ;;  %s29_s30 = sadd.s32 1, %s2131_s27  ;;  %s2135_s28 = sphi %s2187_s28, %s17_s28   ;;  %s2131_s27 = sphi %s2185_s27, %s2653_s27   ;;  %s2127_s26 = sphi %s2183_s26, %s2652_s26   ;;  %s2123_s25 = sphi %s2181_s25, %s2651_s25   ;;  %s2119_s24 = sphi %s2179_s24, %s2650_s24  }
   0x4   : > { %p27_p0 = scmp.ge.s32.totalorder %s26_s29, 4  ;;  %p1700_p1 = scmp.ge.s32.totalorder %s2135_s28, 1 }
   0x5   : > { %p323_p2 = scmp.lt.s32.totalorder %s2135_s28, 9 }
   0x6   : > { %s2655_s29 = smov (%p27_p0, %s26_s29), 0  ;;  %s2657_s30 = smov (!%p27_p0, %s29_s30), %s2131_s27 }
   0x7   : > { %p324_p3 = pnand %p1700_p1, %p323_p2  ;;  %p31_p4 = scmp.ge.s32.totalorder %s2657_s30, 2 }
   0x8   : > { %v447_v0 = vld [vmem:[%s2644_s3] sm:$0xff] (!%p324_p3)  ;;  %v448_v1 = vld [vmem:[%s2644_s3 + $0x8] sm:$0xff] (!%p324_p3)  ;;  %s1701_s12 = sshll.u32 (!%p324_p3), %s2119_s24, 2  ;;  %p395_p5 = scmp.lt.s32.totalorder (!%p324_p3), %s2123_s25, 1  ;;  %vm464_vm0 = vcmask (!%p324_p3), 130048   ;;  %vm941_vm1 = vcmask (!%p324_p3), 1046528  }
   0x9   : > { %s2659_s30 = smov (%p31_p4, %s2657_s30), 0  ;;  %327 = sbr.rel (%p324_p3) target bundleno = 702 (0x2be), region = 48 }
   0xa   : > { %v1935_v2 = vpack.c.bf16 (!%p324_p3), %v448_v1, %v447_v0  ;;  %p411_p6 = scmp.lt.s32.totalorder (!%p324_p3), %s1701_s12, 15  ;;  %s1799_s13 = sadd.s32 (!%p324_p3), 4, %s1701_s12  ;;  %v1726_v15 = vld [vmem:[%s2645_s4] ss:$0 sm:$0xff] (!%p324_p3)  ;;  %vm904_vm2 = vcmask (!%p324_p3), 1040384   ;;  %vm1050_vm3 = vcmask (!%p324_p3), 64512  }
   0xb   : > { %p2220_p7 = scmp.lt.s32.totalorder (!%p324_p3), %s1799_s13, 15  ;;  %s1702_s18 = sadd.s32 (!%p324_p3), 4294967295, %s1701_s12  ;;  %vm1082_vm4 = vcmask (!%p324_p3), 195584  }
   0xc   : > { %1936 = vmatprep.subr.bf16.mxu0 (!%p324_p3), %v1935_v2  ;;  %1944 = vmatprep.subr.bf16.mxu1 (!%p324_p3), %v1935_v2  ;;  %p393_p8 = scmp.gt.s32.totalorder (!%p324_p3), %s1702_s18, 0  ;;  %p1703_p9 = scmp.lt.s32.totalorder (!%p324_p3), %s1702_s18, 15 }
   0xd   : > { %1938 = vmatpush3.bf16.msra.mxu0 (!%p324_p3), %v1935_v2  ;;  %1946 = vmatpush3.bf16.msra.mxu1 (!%p324_p3), %v1935_v2  ;;  %p886_p10 = scmp.lt.s32.totalorder (!%p324_p3), %s2119_s24, 3  ;;  %p777_p11 = scmp.gt.s32.totalorder (!%p324_p3), %s2119_s24, 0 }
   0xe   : > { %1940 = vmatprep.subr.bf16.mxu0 (!%p324_p3), %v1935_v2  ;;  %s2137_s24 = smov (!%p324_p3), 8  }
  0x10   : > { %s2661_s25 = smov (!%p395_p5, %s2123_s25), 1  ;;  %s2663_s13 = smov (!%p2220_p7, %s1799_s13), 15 }
  0x11   : > { %s412_s14 = scalar_select %p411_p6, %s1701_s12, 15 }
  0x12   : > { %s2218_s15 = sshll.u32 %s2661_s25, 5  ;;  %s2665_s18 = smov (!%p393_p8, %s1702_s18), 0 }
  0x13   : > { %s1712_s17 = sshll.u32 %s412_s14, 1  ;;  %s2667_s13 = smov (!%p2220_p7, %s2663_s13), 15 }
  0x14   : > { %s2225_s19 = sadd.s32 %s1712_s17, %s2218_s15  ;;  %s2669_s18 = smov (!%p1703_p9, %s2665_s18), 15 }
  0x15   : > { %s1714_s20 = sshll.u32 %s2225_s19, 3  ;;  %s1719_s25 = sshll.u32 %s2667_s13, 1 }
  0x16   : > { %s2233_s23 = scalar_lea.vmem %s2642_s1, %s1714_s20  ;;  %s429_s8 = sadd.s32 %s1719_s25, %s2218_s15 }
  0x17   : > { %v450_v3 = vld [vmem:[%s2233_s23] sm:$0xff]  ;;  %v451_v4 = vld [vmem:[%s2233_s23 + $0x8] sm:$0xff]  ;;  %v452_v5 = vld [vmem:[%s2233_s23 + $0x10] sm:$0xff]  ;;  %s1708_s9 = sshll.u32 %s2669_s18, 1  ;;  %s1721_s10 = sshll.u32 %s429_s8, 3 }
  0x18   : > { %1855 = vmatprep.mubr.msk.f32.mxu0 %vm464_vm0, %v450_v3  ;;  %v453_v6 = vld [vmem:[%s2233_s23 + $0x18] sm:$0xff]  ;;  %v454_v7 = vld [vmem:[%s2233_s23 + $0x20] sm:$0xff]  ;;  %s401_s11 = sadd.s32 %s2218_s15, %s1708_s9  ;;  %v455_v8 = vld [vmem:[%s2233_s23 + $0x28] sm:$0xff]  ;;  %s431_s16 = scalar_lea.vmem %s2643_s2, %s1721_s10 }
  0x19   : > { %1856 = vmatmul.mubr.msk.f32.vlgmr.msra.gmra.mrb[0].mxu0 %vm464_vm0, %v451_v4  ;;  %s1710_s17 = sshll.u32 %s401_s11, 3  ;;  %v456_v9 = vld [vmem:[%s2233_s23 + $0x30] sm:$0xff]  ;;  %v783_v10 = vld [vmem:[%s431_s16] sm:$0xff]  ;;  %v784_v11 = vld [vmem:[%s431_s16 + $0x8] sm:$0xff]  ;;  %s2138_s13 = smov 16  }
  0x1a   : > { %1942 = vmatpush3.bf16.msra.mxu0 %v1935_v2  ;;  %1858 = vmatprep.mubr.msk.f32.mxu0 %vm464_vm0, %v452_v5  ;;  %s403_s21 = scalar_lea.vmem %s2641_s0, %s1710_s17  ;;  %v457_v12 = vld [vmem:[%s2233_s23 + $0x38] sm:$0xff]  ;;  %s2600_s18 = scalar_lea.vmem %s2648_s7, %s1714_s20 }
  0x1b   : > { %1878 = vmatprep.mubr.msk.f32.mxu1 %vm464_vm0, %v783_v10  ;;  %v674_v13 = vld [vmem:[%s403_s21] sm:$0xff]  ;;  %v675_v14 = vld [vmem:[%s403_s21 + $0x8] sm:$0xff]  ;;  %s2325_s12 = scalar_select %p886_p10, 1, 0 }
  0x1c   : > { %1879 = vmatmul.mubr.msk.f32.vlgmr.msra.gmra.mrb[0].mxu1 %vm464_vm0, %v784_v11  ;;  %s2331_s14 = scalar_select %p777_p11, 1, 0 }
  0x1d   : > { %1859 = vmatmul.mubr.msk.f32.gmra.mrb[2].mxu0 %vm464_vm0, %v453_v6  ;;  %s888_s16 = scvt.s32.f32 %s2325_s12 }
  0x1e   : > { %1861 = vmatprep.mubr.msk.f32.mxu0 %vm464_vm0, %v454_v7  ;;  %s779_s17 = scvt.s32.f32 %s2331_s14 }
  0x21   : > { %1862 = vmatmul.mubr.msk.f32.gmra.mrb[4].mxu0 %vm464_vm0, %v455_v8 }
  0x22   : > { %1864 = vmatprep.mubr.msk.f32.mxu0 %vm464_vm0, %v456_v9 }
  0x25   : > { %1865 = vmatmul.mubr.msk.f32.gmra.mrb[6].mxu0 %vm464_vm0, %v457_v12 }
  0x26   : > { %1871 = vmatprep.mubr.msk.f32.mxu0 %vm464_vm0, %v674_v13 }
  0x29   : > { %1872 = vmatmul.mubr.msk.f32.vlgmr.msra.gmra.mrb[8].mxu0 %vm464_vm0, %v675_v14 }
  0xec   : > { %v1857_v16 = vpop.f32.mrb[0].mxu0 }
  0xed   : > { %v2270_v17 = vadd.f32 %v1857_v16, %v1726_v15  ;;  %v555_v18 = vpop.f32.mrb[1].mxu0 }
  0xee   : > { %v2272_v19 = vadd.f32 %v1726_v15, %v555_v18 }
  0xef   : > { %v595_v20 = vmin.f32 %v2270_v17, 30.0  ;;  %v1880_v31 = vpop.f32.mrb[0].mxu1 }
  0xf0   : > { %v594_v21 = vmin.f32 %v2272_v19, 30.0  ;;  %v1860_v22 = vpop.f32.mrb[2].mxu0  ;;  %v2284_v35 = vadd.f32 %v1880_v31, %v1726_v15  ;;  %v857_v36 = vpop.f32.mrb[1].mxu1 }
  0xf1   : > { %v604_v23 = vmul.f32 1.442695, %v595_v20  ;;  %v2276_v24 = vadd.f32 %v1860_v22, %v1726_v15  ;;  %v565_v25 = vpop.f32.mrb[3].mxu0  ;;  %v2288_v39 = vadd.f32 %v1726_v15, %v857_v36  ;;  %v1751_v20 = vld [vmem:[%s2646_s5 + $0x18] sm:$0xff] }
  0xf2   : > { %v602_v26 = vmul.f32 1.442695, %v594_v21  ;;  %v2278_v27 = vadd.f32 %v1726_v15, %v565_v25  ;;  %v867_v41 = vmin.f32 %v2284_v35, 30.0  ;;  %v1752_v21 = vld [vmem:[%s2646_s5 + $0x20] sm:$0xff] }
  0xf3   : > { %2017 = vpow2.f32 %v604_v23  ;;  %v597_v28 = vmin.f32 %v2276_v24, 30.0  ;;  %v866_v44 = vmin.f32 %v2288_v39, 30.0 }
  0xf4   : > { %2019 = vpow2.f32 %v602_v26  ;;  %v596_v29 = vmin.f32 %v2278_v27, 30.0  ;;  %v1863_v30 = vpop.f32.mrb[4].mxu0  ;;  %v870_v48 = vmul.f32 1.442695, %v867_v41  ;;  %v1947_v26 = vpack.c.bf16 %v1752_v21, %v1751_v20 }
  0xf5   : > { %v608_v32 = vmul.f32 1.442695, %v597_v28  ;;  %v2282_v33 = vadd.f32 %v1863_v30, %v1726_v15  ;;  %v575_v34 = vpop.f32.mrb[5].mxu0  ;;  %v868_v51 = vmul.f32 1.442695, %v866_v44 }
  0xf6   : > { %v606_v37 = vmul.f32 1.442695, %v596_v29  ;;  %v2286_v38 = vadd.f32 %v1726_v15, %v575_v34  ;;  %1948 = vmatprep.subr.bf16.mxu0 %v1947_v26 }
  0xf7   : > { %2021 = vpow2.f32 %v608_v32  ;;  %v599_v40 = vmin.f32 %v2282_v33, 30.0  ;;  %1950 = vmatpush3.bf16.msra.mxu0 %v1947_v26 }
  0xf8   : > { %2023 = vpow2.f32 %v606_v37  ;;  %v598_v42 = vmin.f32 %v2286_v38, 30.0  ;;  %v1866_v43 = vpop.f32.mrb[6].mxu0 }
  0xf9   : > { %v612_v45 = vmul.f32 1.442695, %v599_v40  ;;  %v2294_v46 = vadd.f32 %v1866_v43, %v1726_v15  ;;  %v585_v47 = vpop.f32.mrb[7].mxu0 }
  0xfa   : > { %v610_v49 = vmul.f32 1.442695, %v598_v42  ;;  %v2296_v50 = vadd.f32 %v1726_v15, %v585_v47 }
  0xfb   : > { %2025 = vpow2.f32 %v612_v45  ;;  %v601_v52 = vmin.f32 %v2294_v46, 30.0  ;;  %v1753_v45 = vld [vmem:[%s2646_s5 + $0x28] sm:$0xff] }
  0xfc   : > { %2027 = vpow2.f32 %v610_v49  ;;  %v600_v53 = vmin.f32 %v2296_v50, 30.0  ;;  %v1873_v54 = vpop.f32.mrb[8].mxu0  ;;  %1885 = vmatprep.subr.mxu0 %v1753_v45 }
  0xfd   : > { %v2018_v55 = vpop.eup %2017  ;;  %v616_v56 = vmul.f32 1.442695, %v601_v52  ;;  %2029 = vpow2.f32 %v870_v48  ;;  %v2300_v57 = vadd.f32 %v1873_v54, %v1726_v15  ;;  %v748_v58 = vpop.f32.mrb[9].mxu0  ;;  %1886 = vmatpush3.msra.mxu0 %v1753_v45 }
  0xfe   : > { %v2020_v59 = vpop.eup %2019  ;;  %v619_v60 = vadd.f32 1.0, %v2018_v55  ;;  %v614_v61 = vmul.f32 1.442695, %v600_v53  ;;  %2031 = vpow2.f32 %v868_v51  ;;  %v2302_v62 = vadd.f32 %v1726_v15, %v748_v58 }
  0xff   : > { %v618_v63 = vadd.f32 1.0, %v2020_v59  ;;  %2033 = vpow2.f32 %v616_v56  ;;  %v758_v0 = vmin.f32 %v2300_v57, 30.0 }
 0x100   : > { %v627_v1 = vmul.f32 %v619_v60, %v619_v60  ;;  %2035 = vpow2.f32 %v614_v61  ;;  %v757_v2 = vmin.f32 %v2302_v62, 30.0 }
 0x101   : > { %v2022_v3 = vpop.eup %2021  ;;  %v626_v4 = vmul.f32 %v618_v63, %v618_v63  ;;  %v761_v5 = vmul.f32 1.442695, %v758_v0 }
 0x102   : > { %v2024_v6 = vpop.eup %2023  ;;  %v643_v7 = vadd.f32 1.0, %v627_v1  ;;  %v621_v8 = vadd.f32 1.0, %v2022_v3  ;;  %v759_v9 = vmul.f32 1.442695, %v757_v2  ;;  %v1736_v51 = vadd.f32 -1.0, %v627_v1 }
 0x103   : > { %v642_v10 = vadd.f32 1.0, %v626_v4  ;;  %v620_v11 = vadd.f32 1.0, %v2024_v6  ;;  %2037 = vpow2.f32 %v761_v5  ;;  %v1735_v55 = vadd.f32 -1.0, %v626_v4 }
 0x104   : > { %2039 = vrcp.f32 %v643_v7  ;;  %v629_v12 = vmul.f32 %v621_v8, %v621_v8 }
 0x105   : > { %v2026_v13 = vpop.eup %2025  ;;  %2041 = vrcp.f32 %v642_v10  ;;  %v628_v14 = vmul.f32 %v620_v11, %v620_v11 }
 0x106   : > { %v2028_v15 = vpop.eup %2027  ;;  %v645_v16 = vadd.f32 1.0, %v629_v12  ;;  %v623_v18 = vadd.f32 1.0, %v2026_v13  ;;  %2043 = vpow2.f32 %v759_v9  ;;  %v1738_v1 = vadd.f32 -1.0, %v629_v12 }
 0x107   : > { %v2030_v22 = vpop.eup %2029  ;;  %v644_v23 = vadd.f32 1.0, %v628_v14  ;;  %v622_v25 = vadd.f32 1.0, %v2028_v15  ;;  %v1737_v4 = vadd.f32 -1.0, %v628_v14 }
 0x108   : > { %v2032_v28 = vpop.eup %2031  ;;  %2045 = vrcp.f32 %v645_v16  ;;  %v631_v29 = vmul.f32 %v623_v18, %v623_v18  ;;  %v873_v30 = vadd.f32 1.0, %v2030_v22 }
 0x109   : > { %v2034_v31 = vpop.eup %2033  ;;  %2047 = vrcp.f32 %v644_v23  ;;  %v630_v32 = vmul.f32 %v622_v25, %v622_v25  ;;  %v872_v34 = vadd.f32 1.0, %v2032_v28 }
 0x10a   : > { %v2036_v36 = vpop.eup %2035  ;;  %v647_v37 = vadd.f32 1.0, %v631_v29  ;;  %v625_v40 = vadd.f32 1.0, %v2034_v31  ;;  %v875_v41 = vmul.f32 %v873_v30, %v873_v30  ;;  %v1740_v8 = vadd.f32 -1.0, %v631_v29 }
 0x10b   : > { %v646_v42 = vadd.f32 1.0, %v630_v32  ;;  %v624_v43 = vadd.f32 1.0, %v2036_v36  ;;  %v874_v44 = vmul.f32 %v872_v34, %v872_v34  ;;  %v1739_v9 = vadd.f32 -1.0, %v630_v32 }
 0x10c   : > { %2049 = vrcp.f32 %v647_v37  ;;  %v2316_v47 = vmul.f32 %v625_v40, %v625_v40  ;;  %v879_v48 = vadd.f32 1.0, %v875_v41  ;;  %v1750_v20 = vadd.f32 -1.0, %v875_v41 }
 0x10d   : > { %v2038_v49 = vpop.eup %2037  ;;  %2051 = vrcp.f32 %v646_v42  ;;  %v2319_v52 = vmul.f32 %v624_v43, %v624_v43  ;;  %v878_v53 = vadd.f32 1.0, %v874_v44  ;;  %v1749_v26 = vadd.f32 -1.0, %v874_v44 }
 0x10e   : > { %v2040_v54 = vpop.eup %2039  ;;  %v649_v56 = vadd.f32 1.0, %v2316_v47  ;;  %2053 = vrcp.f32 %v879_v48  ;;  %v764_v58 = vadd.f32 1.0, %v2038_v49  ;;  %v889_v32 = vstv %s888_s16 }
 0x10f   : > { %v2042_v59 = vpop.eup %2041  ;;  %v653_v60 = vmul.f32 %v2040_v54, %v1736_v51  ;;  %v648_v61 = vadd.f32 1.0, %v2319_v52  ;;  %2055 = vrcp.f32 %v878_v53  ;;  %v1742_v36 = vadd.f32 -1.0, %v2316_v47  ;;  %v1076_v54 = vld [vmem:[%s2646_s5 + $0x8] sm:$0xff] }
 0x110   : > { %v2044_v63 = vpop.eup %2043  ;;  %v651_v0 = vmul.f32 %v2042_v59, %v1735_v55  ;;  %2057 = vrcp.f32 %v649_v56  ;;  %v2327_v2 = vmul.f32 %v764_v58, %v764_v58  ;;  %v2365_v37 = vstv %s779_s17 }
 0x111   : > { %v667_v3 = vmul.f32 %v653_v60, %v2270_v17  ;;  %2059 = vrcp.f32 %v648_v61  ;;  %v763_v5 = vadd.f32 1.0, %v2044_v63  ;;  %v1741_v47 = vadd.f32 -1.0, %v2319_v52 }
 0x112   : > { %v2046_v6 = vpop.eup %2045  ;;  %v2335_v7 = vmul.f32 %v651_v0, %v2272_v19  ;;  %v770_v10 = vadd.f32 1.0, %v2327_v2 }
 0x113   : > { %v2048_v11 = vpop.eup %2047  ;;  %v909_v12 = vrot.slane %v667_v3, 7  ;;  %v657_v13 = vmul.f32 %v2046_v6, %v1738_v1  ;;  %v2338_v15 = vmul.f32 %v763_v5, %v763_v5  ;;  %978 = vrot.lane.b32.xlu1 %v667_v3, %s2137_s24  ;;  %v946_v17 = vrot.slane %v667_v3, 1 }
 0x114   : > { %v908_v14 = vrot.slane %v2335_v7, 7  ;;  %v655_v16 = vmul.f32 %v2048_v11, %v1737_v4  ;;  %2061 = vrcp.f32 %v770_v10  ;;  %976 = vrot.lane.b32.xlu0 %v2335_v7, %s2137_s24  ;;  %v945_v19 = vrot.slane %v2335_v7, 1 }
 0x115   : > { %v2348_v18 = vmul.f32 %v657_v13, %v2276_v24  ;;  %v769_v21 = vadd.f32 1.0, %v2338_v15  ;;  %v967_v22 = vsel %vm941_vm1, %v946_v17, 0.0  ;;  %v1746_v1 = vadd.f32 -1.0, %v2327_v2 }
 0x116   : > { %v2050_v23 = vpop.eup %2049  ;;  %v2353_v25 = vmul.f32 %v655_v16, %v2278_v27  ;;  %v947_v28 = vsel %vm941_vm1, %v945_v19, %v946_v17  ;;  %v2359_v29 = vsel %vm904_vm2, %v908_v14, %v909_v12  ;;  %v1745_v11 = vadd.f32 -1.0, %v2338_v15 }
 0x117   : > { %v2052_v30 = vpop.eup %2051  ;;  %v661_v24 = vmul.f32 %v2050_v23, %v1740_v8  ;;  %2063 = vrcp.f32 %v769_v21  ;;  %1020 = vrot.lane.b32.xlu1 %v967_v22, %s2138_s13  ;;  %v949_v31 = vrot.slane %v2348_v18, 1  ;;  %v912_v42 = vrot.slane %v2348_v18, 7 }
 0x118   : > { %v2054_v34 = vpop.eup %2053  ;;  %v659_v27 = vmul.f32 %v2052_v30, %v1739_v9  ;;  %1018 = vrot.lane.b32.xlu0 %v947_v28, %s2138_s13  ;;  %v948_v40 = vrot.slane %v2353_v25, 1  ;;  %v911_v45 = vrot.slane %v2353_v25, 7  ;;  %v1770_v28 = vld [vmem:[%s2646_s5 + $0x30] sm:$0xff] }
 0x119   : > { %v2056_v41 = vpop.eup %2055  ;;  %v2370_v43 = vmul.f32 %v661_v24, %v2282_v33  ;;  %v883_v44 = vmul.f32 %v2054_v34, %v1750_v20  ;;  %v1075_v33 = vld [vmem:[%s2646_s5] sm:$0xff] }
 0x11a   : > { %v2058_v48 = vpop.eup %2057  ;;  %v2374_v49 = vmul.f32 %v659_v27, %v2286_v38  ;;  %v881_v51 = vmul.f32 %v2056_v41, %v1749_v26  ;;  %v2380_v53 = vsel %vm941_vm1, %v948_v40, %v949_v31  ;;  %v1951_v63 = vpack.c.bf16 %v1076_v54, %v1075_v33 }
 0x11b   : > { %v2060_v55 = vpop.eup %2059  ;;  %v915_v38 = vrot.slane %v2370_v43, 7  ;;  %v665_v56 = vmul.f32 %v2058_v48, %v1742_v36  ;;  %v885_v52 = vmul.f32 %v883_v44, %v2284_v35  ;;  %v952_v58 = vrot.slane %v2370_v43, 1 }
 0x11c   : > { %v663_v59 = vmul.f32 %v2060_v55, %v1741_v47  ;;  %v884_v60 = vmul.f32 %v881_v51, %v2288_v39  ;;  %v951_v61 = vrot.slane %v2374_v49, 1  ;;  %v2402_v4 = vsel %vm904_vm2, %v911_v45, %v912_v42  ;;  %1952 = vmatprep.subr.bf16.mxu1 %v1951_v63 }
 0x11d   : > { %v2394_v0 = vmul.f32 %v665_v56, %v2294_v46  ;;  %v2397_v3 = vmul.f32 %v889_v32, %v885_v52  ;;  %v914_v46 = vrot.slane %v2374_v49, 7  ;;  %1954 = vmatpush3.bf16.msra.mxu1 %v1951_v63  ;;  %v969_v51 = vsel %vm941_vm1, %v952_v58, 0.0 }
 0x11e   : > { %v2062_v35 = vpop.eup %2061  ;;  %v2405_v5 = vmul.f32 %v663_v59, %v2296_v50  ;;  %v953_v39 = vsel %vm941_vm1, %v951_v61, %v952_v58  ;;  %v2410_v6 = vmul.f32 %v889_v32, %v884_v60  ;;  %v1077_v50 = vld [vmem:[%s2646_s5 + $0x10] sm:$0xff]  ;;  %v936_v33 = vsel %vm904_vm2, 0.0, %v908_v14 }
 0x11f   : > { %v918_v2 = vrot.slane %v2394_v0, 7  ;;  %v774_v8 = vmul.f32 %v2062_v35, %v1746_v1  ;;  %v955_v9 = vrot.slane %v2394_v0, 1  ;;  %v958_v10 = vrot.slane %v2397_v3, 1  ;;  %1903 = vmatprep.subr.mxu1 %v1077_v50  ;;  %v1772_v35 = vld [vmem:[%s2646_s5 + $0x40] sm:$0xff] }
 0x120   : > { %v954_v12 = vrot.slane %v2405_v5, 1  ;;  %v957_v13 = vrot.slane %v2410_v6, 1  ;;  %v2425_v17 = vsel %vm904_vm2, %v914_v46, %v915_v38  ;;  %v917_v20 = vrot.slane %v2405_v5, 7 }
 0x121   : > { %v2064_v16 = vpop.eup %2063  ;;  %v776_v19 = vmul.f32 %v774_v8, %v2300_v57  ;;  %v920_v23 = vrot.slane %v2410_v6, 7  ;;  %1904 = vmatpush3.msra.mxu1 %v1077_v50  ;;  %v1771_v57 = vld [vmem:[%s2646_s5 + $0x38] sm:$0xff]  ;;  %v921_v24 = vrot.slane %v2397_v3, 7 }
 0x122   : > { %v772_v21 = vmul.f32 %v2064_v16, %v1745_v11  ;;  %v956_v22 = vsel %vm941_vm1, %v954_v12, %v955_v9  ;;  %v959_v15 = vsel %vm941_vm1, %v957_v13, %v958_v10  ;;  %v2442_v30 = vsel %vm904_vm2, %v917_v20, %v918_v2 }
 0x123   : > { %v782_v26 = vmul.f32 %v2365_v37, %v776_v19  ;;  %v2446_v34 = vpack.c.bf16 %v1771_v57, %v1770_v28  ;;  %v2452_v36 = vsel %vm904_vm2, %v920_v23, %v921_v24  ;;  %v938_v12 = vsel %vm904_vm2, 0.0, %v914_v46 }
 0x124   : > { %v775_v32 = vmul.f32 %v772_v21, %v2302_v62 }
 0x125   : > { %974 = vrot.lane.b32.xlu0 %v782_v26, %s2137_s24  ;;  %v943_v27 = vrot.slane %v782_v26, 1  ;;  %v906_v41 = vrot.slane %v782_v26, 7  ;;  %1956 = vmatprep.subr.bf16.mxu1 %v2446_v34 }
 0x126   : > { %v781_v40 = vmul.f32 %v2365_v37, %v775_v32  ;;  %v968_v37 = vsel %vm941_vm1, %v949_v31, 0.0  ;;  %v971_v31 = vsel %vm941_vm1, %v958_v10, 0.0 }
 0x127   : > { %v966_v42 = vsel %vm941_vm1, %v943_v27, 0.0 }
 0x128   : > { %1016 = vrot.lane.b32.xlu1 %v966_v42, %s2138_s13  ;;  %v942_v62 = vrot.slane %v781_v40, 1  ;;  %v905_v44 = vrot.slane %v781_v40, 7 }
 0x129   : > { %972 = vrot.lane.b32.xlu0 %v781_v40, %s2137_s24 }
 0x12a   : > { %v944_v48 = vsel %vm941_vm1, %v942_v62, %v943_v27  ;;  %v907_v47 = vsel %vm904_vm2, %v905_v44, %v906_v41  ;;  %v935_v14 = vsel %vm904_vm2, 0.0, %v905_v44 }
 0x12c   : > { %1014 = vrot.lane.b32.xlu1 %v944_v48, %s2138_s13 }
 0x12d   : > { %980 = vrot.lane.b32.xlu0 %v2353_v25, %s2137_s24 }
 0x130   : > { %982 = vrot.lane.b32.xlu1 %v2348_v18, %s2137_s24  ;;  %v970_v18 = vsel %vm941_vm1, %v955_v9, 0.0 }
 0x131   : > { %1022 = vrot.lane.b32.xlu0 %v2380_v53, %s2138_s13 }
 0x134   : > { %1024 = vrot.lane.b32.xlu1 %v968_v37, %s2138_s13 }
 0x135   : > { %984 = vrot.lane.b32.xlu0 %v2374_v49, %s2137_s24  ;;  %v939_v49 = vsel %vm904_vm2, 0.0, %v917_v20  ;;  %v940_v20 = vsel %vm904_vm2, 0.0, %v920_v23 }
 0x138   : > { %986 = vrot.lane.b32.xlu1 %v2370_v43, %s2137_s24 }
 0x139   : > { %1026 = vrot.lane.b32.xlu0 %v953_v39, %s2138_s13  ;;  %v937_v39 = vsel %vm904_vm2, 0.0, %v911_v45 }
 0x13c   : > { %1028 = vrot.lane.b32.xlu1 %v969_v51, %s2138_s13 }
 0x13d   : > { %988 = vrot.lane.b32.xlu0 %v2405_v5, %s2137_s24 }
 0x140   : > { %990 = vrot.lane.b32.xlu1 %v2394_v0, %s2137_s24 }
 0x141   : > { %1030 = vrot.lane.b32.xlu0 %v956_v22, %s2138_s13 }
 0x144   : > { %1032 = vrot.lane.b32.xlu1 %v970_v18, %s2138_s13 }
 0x145   : > { %992 = vrot.lane.b32.xlu0 %v2410_v6, %s2137_s24 }
 0x148   : > { %994 = vrot.lane.b32.xlu1 %v2397_v3, %s2137_s24 }
 0x149   : > { %1034 = vrot.lane.b32.xlu0 %v959_v15, %s2138_s13 }
 0x14c   : > { %1036 = vrot.lane.b32.xlu1 %v971_v31, %s2138_s13  ;;  %v1781_v31 = vld [vmem:[%s2647_s6] ss:$0 sm:$0xff] }
 0x185   : > { %v979_v43 = vpop.permute.xlu1 %978 }
 0x186   : > { %v977_v53 = vpop.permute.xlu0 %976  ;;  %v1054_v56 = vsel %vm1050_vm3, %v2359_v29, %v979_v43 }
 0x187   : > { %v1053_v55 = vsel %vm1050_vm3, %v936_v33, %v977_v53 }
 0x189   : > { %v1021_v54 = vpop.permute.xlu1 %1020 }
 0x18a   : > { %v1019_v38 = vpop.permute.xlu0 %1018  ;;  %v1066_v58 = vsel %vm464_vm0, %v1054_v56, %v1021_v54 }
 0x18b   : > { %v1065_v52 = vsel %vm464_vm0, %v1053_v55, %v1019_v38 }
 0x18c   : > { %1887 = vmatprep.mubr.msk.f32.mxu0 %vm1082_vm4, %v1065_v52 }
 0x18d   : > { %1888 = vmatmul.mubr.msk.f32.vlgmr.msra.gmra.mrb[10].mxu0 %vm1082_vm4, %v1066_v58 }
 0x197   : > { %v975_v59 = vpop.permute.xlu0 %974 }
 0x198   : > { %v1052_v0 = vsel %vm1050_vm3, %v907_v47, %v975_v59 }
 0x19a   : > { %v1017_v7 = vpop.permute.xlu1 %1016 }
 0x19b   : > { %v973_v60 = vpop.permute.xlu0 %972  ;;  %v1064_v3 = vsel %vm464_vm0, %v1052_v0, %v1017_v7 }
 0x19c   : > { %v1051_v61 = vsel %vm1050_vm3, %v935_v14, %v973_v60 }
 0x19e   : > { %v1015_v63 = vpop.permute.xlu1 %1014 }
 0x19f   : > { %v1063_v29 = vsel %vm464_vm0, %v1051_v61, %v1015_v63  ;;  %v981_v1 = vpop.permute.xlu0 %980 }
 0x1a0   : > { %1905 = vmatprep.mubr.msk.f32.mxu1 %vm1082_vm4, %v1063_v29  ;;  %v1055_v8 = vsel %vm1050_vm3, %v937_v39, %v981_v1 }
 0x1a1   : > { %1906 = vmatmul.mubr.msk.f32.vlgmr.msra.gmra.mrb[2].mxu1 %vm1082_vm4, %v1064_v3 }
 0x1a2   : > { %v983_v2 = vpop.permute.xlu1 %982  ;;  %1908 = vmatprep.mubr.msk.f32.mxu1 %vm1082_vm4, %v1065_v52  ;;  %1958 = vmatpush3.bf16.msra.mxu1 %v2446_v34 }
 0x1a3   : > { %v1023_v9 = vpop.permute.xlu0 %1022  ;;  %1921 = vmatprep.subr.mxu1 %v1772_v35  ;;  %v1056_v25 = vsel %vm1050_vm3, %v2402_v4, %v983_v2 }
 0x1a4   : > { %v1067_v10 = vsel %vm464_vm0, %v1055_v8, %v1023_v9 }
 0x1a5   : > { %1890 = vmatprep.mubr.msk.f32.mxu0 %vm1082_vm4, %v1067_v10  ;;  %1909 = vmatmul.mubr.msk.f32.gmra.mrb[4].mxu1 %vm1082_vm4, %v1066_v58 }
 0x1a6   : > { %v1025_v50 = vpop.permute.xlu1 %1024  ;;  %1911 = vmatprep.mubr.msk.f32.mxu1 %vm1082_vm4, %v1067_v10  ;;  %1922 = vmatpush3.msra.mxu1 %v1772_v35 }
 0x1a7   : > { %v1068_v45 = vsel %vm464_vm0, %v1056_v25, %v1025_v50  ;;  %v985_v11 = vpop.permute.xlu0 %984 }
 0x1a8   : > { %1891 = vmatmul.mubr.msk.f32.gmra.mrb[12].mxu0 %vm1082_vm4, %v1068_v45  ;;  %v1057_v16 = vsel %vm1050_vm3, %v938_v12, %v985_v11 }
 0x1a9   : > { %1912 = vmatmul.mubr.msk.f32.gmra.mrb[6].mxu1 %vm1082_vm4, %v1068_v45 }
 0x1aa   : > { %v987_v13 = vpop.permute.xlu1 %986 }
 0x1ab   : > { %v1027_v19 = vpop.permute.xlu0 %1026  ;;  %v1058_v21 = vsel %vm1050_vm3, %v2425_v17, %v987_v13 }
 0x1ac   : > { %v1069_v4 = vsel %vm464_vm0, %v1057_v16, %v1027_v19 }
 0x1ad   : > { %1893 = vmatprep.mubr.msk.f32.mxu0 %vm1082_vm4, %v1069_v4  ;;  %1914 = vmatprep.mubr.msk.f32.mxu1 %vm1082_vm4, %v1069_v4 }
 0x1ae   : > { %v1029_v22 = vpop.permute.xlu1 %1028 }
 0x1af   : > { %v1070_v15 = vsel %vm464_vm0, %v1058_v21, %v1029_v22  ;;  %v989_v26 = vpop.permute.xlu0 %988 }
 0x1b0   : > { %1894 = vmatmul.mubr.msk.f32.gmra.mrb[14].mxu0 %vm1082_vm4, %v1070_v15  ;;  %1915 = vmatmul.mubr.msk.f32.gmra.mrb[8].mxu1 %vm1082_vm4, %v1070_v15  ;;  %v1059_v28 = vsel %vm1050_vm3, %v939_v49, %v989_v26 }
 0x1b1   : > { %1923 = vmatprep.mubr.msk.f32.mxu1 %vm1082_vm4, %v1067_v10 }
 0x1b2   : > { %v991_v46 = vpop.permute.xlu1 %990 }
 0x1b3   : > { %v1031_v57 = vpop.permute.xlu0 %1030  ;;  %v1060_v24 = vsel %vm1050_vm3, %v2442_v30, %v991_v46 }
 0x1b4   : > { %v1071_v17 = vsel %vm464_vm0, %v1059_v28, %v1031_v57  ;;  %1924 = vmatmul.mubr.msk.f32.vlgmr.msra.gmra.mrb[2].mxu1 %vm1082_vm4, %v1068_v45 }
 0x1b5   : > { %1896 = vmatprep.mubr.msk.f32.mxu0 %vm1082_vm4, %v1071_v17  ;;  %1926 = vmatprep.mubr.msk.f32.mxu1 %vm1082_vm4, %v1069_v4 }
 0x1b6   : > { %v1033_v32 = vpop.permute.xlu1 %1032 }
 0x1b7   : > { %v1072_v5 = vsel %vm464_vm0, %v1060_v24, %v1033_v32  ;;  %v993_v34 = vpop.permute.xlu0 %992 }
 0x1b8   : > { %1897 = vmatmul.mubr.msk.f32.gmra.mrb[16].mxu0 %vm1082_vm4, %v1072_v5  ;;  %1927 = vmatmul.mubr.msk.f32.gmra.mrb[4].mxu1 %vm1082_vm4, %v1070_v15  ;;  %v1061_v40 = vsel %vm1050_vm3, %v940_v20, %v993_v34 }
 0x1b9   : > { %1929 = vmatprep.mubr.msk.f32.mxu1 %vm1082_vm4, %v1071_v17 }
 0x1ba   : > { %v995_v27 = vpop.permute.xlu1 %994 }
 0x1bb   : > { %v1035_v41 = vpop.permute.xlu0 %1034  ;;  %v1062_v42 = vsel %vm1050_vm3, %v2452_v36, %v995_v27 }
 0x1bc   : > { %v1073_v30 = vsel %vm464_vm0, %v1061_v40, %v1035_v41  ;;  %1930 = vmatmul.mubr.msk.f32.gmra.mrb[6].mxu1 %vm1082_vm4, %v1072_v5 }
 0x1bd   : > { %1932 = vmatprep.mubr.msk.f32.mxu1 %vm1082_vm4, %v1073_v30 }
 0x1be   : > { %v1037_v62 = vpop.permute.xlu1 %1036 }
 0x1bf   : > { %v1074_v44 = vsel %vm464_vm0, %v1062_v42, %v1037_v62 }
 0x1c0   : > { %1933 = vmatmul.mubr.msk.f32.gmra.mrb[8].mxu1 %vm1082_vm4, %v1074_v44 }
 0x260   : > { %v1889_v6 = vpop.f32.mrb[10].mxu0 }
 0x261   : > { %v1173_v23 = vpop.f32.mrb[11].mxu0 }
 0x27b   : > { %v1892_v48 = vpop.f32.mrb[12].mxu0 }
 0x27c   : > { %v1183_v47 = vpop.f32.mrb[13].mxu0 }
 0x283   : > { %v1895_v37 = vpop.f32.mrb[14].mxu0 }
 0x284   : > { %v1193_v51 = vpop.f32.mrb[15].mxu0 }
 0x287   : > { %v1925_v18 = vpop.f32.mrb[2].mxu1 }
 0x288   : > { %v1959_v43 = vadd.f32 %v1925_v18, %v1889_v6  ;;  %v1399_v53 = vpop.f32.mrb[3].mxu1 }
 0x289   : > { %v1960_v33 = vadd.f32 %v1399_v53, %v1173_v23 }
 0x28a   : > { %v2571_v36 = vadd.f32 %v1959_v43, %v1781_v31 }
 0x28b   : > { %v2573_v54 = vadd.f32 %v1960_v33, %v1781_v31  ;;  %v1898_v55 = vpop.f32.mrb[16].mxu0  ;;  %v1928_v38 = vpop.f32.mrb[4].mxu1 }
 0x28c   : > { %v1462_v56 = vmin.f32 %v2571_v36, 30.0  ;;  %v1961_v52 = vadd.f32 %v1928_v38, %v1892_v48  ;;  %v1203_v58 = vpop.f32.mrb[17].mxu0  ;;  %v1409_v59 = vpop.f32.mrb[5].mxu1 }
 0x28d   : > { %v1461_v7 = vmin.f32 %v2573_v54, 30.0  ;;  %v1962_v60 = vadd.f32 %v1409_v59, %v1183_v47 }
 0x28e   : > { %v1471_v14 = vmul.f32 1.442695, %v1462_v56  ;;  %v2577_v61 = vadd.f32 %v1961_v52, %v1781_v31 }
 0x28f   : > { %v1469_v63 = vmul.f32 1.442695, %v1461_v7  ;;  %v2579_v0 = vadd.f32 %v1962_v60, %v1781_v31  ;;  %v1931_v29 = vpop.f32.mrb[6].mxu1 }
 0x290   : > { %2065 = vpow2.f32 %v1471_v14  ;;  %v1464_v1 = vmin.f32 %v2577_v61, 30.0  ;;  %v1963_v3 = vadd.f32 %v1931_v29, %v1895_v37  ;;  %v1419_v35 = vpop.f32.mrb[7].mxu1 }
 0x291   : > { %2067 = vpow2.f32 %v1469_v63  ;;  %v1463_v39 = vmin.f32 %v2579_v0, 30.0  ;;  %v1964_v2 = vadd.f32 %v1419_v35, %v1193_v51 }
 0x292   : > { %v1475_v8 = vmul.f32 1.442695, %v1464_v1  ;;  %v2583_v9 = vadd.f32 %v1963_v3, %v1781_v31 }
 0x293   : > { %v1473_v10 = vmul.f32 1.442695, %v1463_v39  ;;  %v2585_v25 = vadd.f32 %v1964_v2, %v1781_v31  ;;  %v1934_v50 = vpop.f32.mrb[8].mxu1 }
 0x294   : > { %2069 = vpow2.f32 %v1475_v8  ;;  %v1466_v45 = vmin.f32 %v2583_v9, 30.0  ;;  %v1965_v11 = vadd.f32 %v1934_v50, %v1898_v55  ;;  %v1429_v12 = vpop.f32.mrb[9].mxu1 }
 0x295   : > { %2071 = vpow2.f32 %v1473_v10  ;;  %v1465_v13 = vmin.f32 %v2585_v25, 30.0  ;;  %v1966_v16 = vadd.f32 %v1429_v12, %v1203_v58 }
 0x296   : > { %v1479_v19 = vmul.f32 1.442695, %v1466_v45  ;;  %v2589_v4 = vadd.f32 %v1965_v11, %v1781_v31 }
 0x297   : > { %v1477_v21 = vmul.f32 1.442695, %v1465_v13  ;;  %v2591_v22 = vadd.f32 %v1966_v16, %v1781_v31 }
 0x298   : > { %2073 = vpow2.f32 %v1479_v19  ;;  %v1468_v15 = vmin.f32 %v2589_v4, 30.0 }
 0x299   : > { %2075 = vpow2.f32 %v1477_v21  ;;  %v1467_v26 = vmin.f32 %v2591_v22, 30.0 }
 0x29a   : > { %v2066_v49 = vpop.eup %2065  ;;  %v1483_v46 = vmul.f32 1.442695, %v1468_v15 }
 0x29b   : > { %v2068_v28 = vpop.eup %2067  ;;  %v1486_v57 = vadd.f32 1.0, %v2066_v49  ;;  %v1481_v17 = vmul.f32 1.442695, %v1467_v26 }
 0x29c   : > { %v1485_v24 = vadd.f32 1.0, %v2068_v28  ;;  %2077 = vpow2.f32 %v1483_v46 }
 0x29d   : > { %v1494_v32 = vmul.f32 %v1486_v57, %v1486_v57  ;;  %2079 = vpow2.f32 %v1481_v17 }
 0x29e   : > { %v2070_v5 = vpop.eup %2069  ;;  %v1493_v34 = vmul.f32 %v1485_v24, %v1485_v24 }
 0x29f   : > { %v2072_v20 = vpop.eup %2071  ;;  %v1510_v27 = vadd.f32 1.0, %v1494_v32  ;;  %v1488_v40 = vadd.f32 1.0, %v2070_v5  ;;  %v1783_v52 = vadd.f32 -1.0, %v1494_v32 }
 0x2a0   : > { %v1509_v41 = vadd.f32 1.0, %v1493_v34  ;;  %v1487_v30 = vadd.f32 1.0, %v2072_v20  ;;  %v1782_v7 = vadd.f32 -1.0, %v1493_v34 }
 0x2a1   : > { %2081 = vrcp.f32 %v1510_v27  ;;  %v1496_v42 = vmul.f32 %v1488_v40, %v1488_v40 }
 0x2a2   : > { %v2074_v62 = vpop.eup %2073  ;;  %2083 = vrcp.f32 %v1509_v41  ;;  %v1495_v44 = vmul.f32 %v1487_v30, %v1487_v30 }
 0x2a3   : > { %v2076_v6 = vpop.eup %2075  ;;  %v1512_v23 = vadd.f32 1.0, %v1496_v42  ;;  %v1490_v48 = vadd.f32 1.0, %v2074_v62  ;;  %v1785_v35 = vadd.f32 -1.0, %v1496_v42 }
 0x2a4   : > { %v1511_v47 = vadd.f32 1.0, %v1495_v44  ;;  %v1489_v37 = vadd.f32 1.0, %v2076_v6  ;;  %v1784_v8 = vadd.f32 -1.0, %v1495_v44 }
 0x2a5   : > { %2085 = vrcp.f32 %v1512_v23  ;;  %v1498_v51 = vmul.f32 %v1490_v48, %v1490_v48 }
 0x2a6   : > { %v2078_v18 = vpop.eup %2077  ;;  %2087 = vrcp.f32 %v1511_v47  ;;  %v1497_v31 = vmul.f32 %v1489_v37, %v1489_v37 }
 0x2a7   : > { %v2080_v43 = vpop.eup %2079  ;;  %v1514_v53 = vadd.f32 1.0, %v1498_v51  ;;  %v1492_v33 = vadd.f32 1.0, %v2078_v18  ;;  %v1787_v12 = vadd.f32 -1.0, %v1498_v51 }
 0x2a8   : > { %v1513_v55 = vadd.f32 1.0, %v1497_v31  ;;  %v1491_v38 = vadd.f32 1.0, %v2080_v43  ;;  %v1786_v16 = vadd.f32 -1.0, %v1497_v31 }
 0x2a9   : > { %2089 = vrcp.f32 %v1514_v53  ;;  %v1500_v56 = vmul.f32 %v1492_v33, %v1492_v33 }
 0x2aa   : > { %2091 = vrcp.f32 %v1513_v55  ;;  %v1499_v58 = vmul.f32 %v1491_v38, %v1491_v38 }
 0x2ab   : > { %v2082_v59 = vpop.eup %2081  ;;  %v1516_v60 = vadd.f32 1.0, %v1500_v56  ;;  %v1789_v26 = vadd.f32 -1.0, %v1500_v56 }
 0x2ac   : > { %v2084_v14 = vpop.eup %2083  ;;  %v1520_v63 = vmul.f32 %v2082_v59, %v1783_v52  ;;  %v1515_v29 = vadd.f32 1.0, %v1499_v58  ;;  %v1788_v46 = vadd.f32 -1.0, %v1499_v58 }
 0x2ad   : > { %v1518_v1 = vmul.f32 %v2084_v14, %v1782_v7  ;;  %2093 = vrcp.f32 %v1516_v60 }
 0x2ae   : > { %v1534_v3 = vmul.f32 %v1520_v63, %v2571_v36  ;;  %2095 = vrcp.f32 %v1515_v29 }
 0x2af   : > { %v2086_v39 = vpop.eup %2085  ;;  %v1533_v2 = vmul.f32 %v1518_v1, %v2573_v54 }
 0x2b0   : > { %v2088_v10 = vpop.eup %2087  ;;  %1542 = vst.msk [vmem:[%s2600_s18 + $0x8] sm:$0xff] %vm464_vm0, %v1534_v3  ;;  %v1524_v50 = vmul.f32 %v2086_v39, %v1785_v35 }
 0x2b1   : > { %1541 = vst.msk [vmem:[%s2600_s18] sm:$0xff] %vm464_vm0, %v1533_v2  ;;  %v1522_v45 = vmul.f32 %v2088_v10, %v1784_v8 }
 0x2b2   : > { %v1536_v11 = vmul.f32 %v1524_v50, %v2577_v61 }
 0x2b3   : > { %v2090_v36 = vpop.eup %2089  ;;  %v1535_v13 = vmul.f32 %v1522_v45, %v2579_v0 }
 0x2b4   : > { %v2092_v19 = vpop.eup %2091  ;;  %1544 = vst.msk [vmem:[%s2600_s18 + $0x18] sm:$0xff] %vm464_vm0, %v1536_v11  ;;  %v1528_v54 = vmul.f32 %v2090_v36, %v1787_v12 }
 0x2b5   : > { %1543 = vst.msk [vmem:[%s2600_s18 + $0x10] sm:$0xff] %vm464_vm0, %v1535_v13  ;;  %v1526_v21 = vmul.f32 %v2092_v19, %v1786_v16 }
 0x2b6   : > { %v1538_v15 = vmul.f32 %v1528_v54, %v2583_v9 }
 0x2b7   : > { %v2094_v61 = vpop.eup %2093  ;;  %v1537_v49 = vmul.f32 %v1526_v21, %v2585_v25 }
 0x2b8   : > { %v2096_v28 = vpop.eup %2095  ;;  %1546 = vst.msk [vmem:[%s2600_s18 + $0x28] sm:$0xff] %vm464_vm0, %v1538_v15  ;;  %v1532_v0 = vmul.f32 %v2094_v61, %v1789_v26 }
 0x2b9   : > { %1545 = vst.msk [vmem:[%s2600_s18 + $0x20] sm:$0xff] %vm464_vm0, %v1537_v49  ;;  %v1530_v57 = vmul.f32 %v2096_v28, %v1788_v46 }
 0x2ba   : > { %v1540_v17 = vmul.f32 %v1532_v0, %v2589_v4 }
 0x2bb   : > { %v1539_v24 = vmul.f32 %v1530_v57, %v2591_v22 }
 0x2bc   : > { %1548 = vst.msk [vmem:[%s2600_s18 + $0x38] sm:$0xff] %vm464_vm0, %v1540_v17 }
 0x2bd   : > { %1547 = vst.msk [vmem:[%s2600_s18 + $0x30] sm:$0xff] %vm464_vm0, %v1539_v24 }
 0x2be PF: > { %s17_s28 = sadd.s32 1, %s2135_s28   ;;  %s2650_s24 = smov %s2127_s26 }
 0x2bf   : > { %p14_p12 = scmp.ge.s32.totalorder %s17_s28, 10   ;;  %s2651_s25 = smov %s2131_s27 }
 0x2c0   : > { %s2652_s26 = smov %s2655_s29  ;;  %s2653_s27 = smov %s2659_s30 }
 0x2c1   :  { %16 = sbr.rel (!%p14_p12) target bundleno = 3 (0x3), region = 86 }

// kernel: residual_block.3
= control target key start
LH: loop header
LB: loop body
LE: loop exit
PB: predicated region body
PF: predicated region fallthrough
CT: control target
= control target key end

     0   :  { %s2291_s27 = smov 0   ;;  %s2293_s28 = smov 0   ;;  %s2764_s0 = inlined_call_operand.vmem [shape: f32[2,16,16,16], index: 0, kind: input, shape index: {}, may-alias: {0,1,2}]   ;;  %s2765_s1 = inlined_call_operand.vmem [shape: f32[2,16,16,16], index: 1, kind: input, shape index: {}, may-alias: {0,1,2}]   ;;  %s2766_s2 = inlined_call_operand.vmem [shape: f32[2,16,16,16], index: 2, kind: input, shape index: {}, may-alias: {0,1,2}]   ;;  %s2767_s3 = inlined_call_operand.vmem [shape: f32[16,8], index: 3, kind: input, shape index: {}]   ;;  %s2768_s4 = inlined_call_operand.vmem [shape: f32[1,8], index: 4, kind: input, shape index: {}]   ;;  %s2769_s5 = inlined_call_operand.vmem [shape: f32[3,24,16], index: 5, kind: input, shape index: {}]   ;;  %s2770_s6 = inlined_call_operand.vmem [shape: f32[1,16], index: 6, kind: input, shape index: {}]   ;;  %s2771_s7 = inlined_call_operand.vmem [shape: f32[2,16,16,16], index: 7, kind: input, shape index: {}]   ;;  %s2772_s8 = inlined_call_operand.vmem [shape: f32[2,16,16,16], index: 8, kind: output, shape index: {}]  }
   0x1   :  { %s2295_s29 = smov 0   ;;  %s2297_s30 = smov 0  }
   0x2   :  { %s2299_s9 = smov 0  }
   0x3 LB: > { %s27_s10 = sadd.s32 1, %s2234_s29  ;;  %s30_s11 = sadd.s32 1, %s2238_s30  ;;  %s2242_s9 = sphi %s2299_s9, %s18_s9   ;;  %s2238_s30 = sphi %s2297_s30, %s2777_s30   ;;  %s2234_s29 = sphi %s2295_s29, %s2776_s29   ;;  %s2230_s28 = sphi %s2293_s28, %s2775_s28   ;;  %s2226_s27 = sphi %s2291_s27, %s2774_s27  }
   0x4   : > { %p28_p0 = scmp.ge.s32.totalorder %s27_s10, 4  ;;  %p1803_p1 = scmp.ge.s32.totalorder %s2242_s9, 1 }
   0x5   : > { %p366_p2 = scmp.lt.s32.totalorder %s2242_s9, 9 }
   0x6   : > { %s2779_s10 = smov (%p28_p0, %s27_s10), 0  ;;  %s2781_s11 = smov (!%p28_p0, %s30_s11), %s2238_s30 }
   0x7   : > { %p367_p3 = pnand %p1803_p1, %p366_p2  ;;  %p32_p4 = scmp.ge.s32.totalorder %s2781_s11, 2 }
   0x8   : > { %v513_v0 = vld [vmem:[%s2767_s3] sm:$0xff] (!%p367_p3)  ;;  %v514_v1 = vld [vmem:[%s2767_s3 + $0x8] sm:$0xff] (!%p367_p3)  ;;  %s1804_s16 = sshll.u32 (!%p367_p3), %s2226_s27, 2  ;;  %p450_p5 = scmp.lt.s32.totalorder (!%p367_p3), %s2230_s28, 1  ;;  %vm530_vm0 = vcmask (!%p367_p3), 130048   ;;  %vm1007_vm1 = vcmask (!%p367_p3), 1046528  }
   0x9   : > { %s2783_s11 = smov (%p32_p4, %s2781_s11), 0  ;;  %370 = sbr.rel (%p367_p3) target bundleno = 704 (0x2c0), region = 52 }
   0xa   : > { %v2042_v2 = vpack.c.bf16 (!%p367_p3), %v514_v1, %v513_v0  ;;  %p466_p6 = scmp.lt.s32.totalorder (!%p367_p3), %s1804_s16, 15  ;;  %s1906_s17 = sadd.s32 (!%p367_p3), 4, %s1804_s16  ;;  %v1833_v15 = vld [vmem:[%s2768_s4] ss:$0 sm:$0xff] (!%p367_p3)  ;;  %vm970_vm2 = vcmask (!%p367_p3), 1040384   ;;  %vm1116_vm3 = vcmask (!%p367_p3), 64512  }
   0xb   : > { %s1805_s21 = sadd.s32 (!%p367_p3), 4294967295, %s1804_s16  ;;  %p2333_p7 = scmp.lt.s32.totalorder (!%p367_p3), %s1906_s17, 15  ;;  %vm1148_vm4 = vcmask (!%p367_p3), 195584  }
   0xc   : > { %2043 = vmatprep.subr.bf16.mxu0 (!%p367_p3), %v2042_v2  ;;  %2051 = vmatprep.subr.bf16.mxu1 (!%p367_p3), %v2042_v2  ;;  %p448_p8 = scmp.gt.s32.totalorder (!%p367_p3), %s1805_s21, 0  ;;  %p1806_p9 = scmp.lt.s32.totalorder (!%p367_p3), %s1805_s21, 15 }
   0xd   : > { %2045 = vmatpush3.bf16.msra.mxu0 (!%p367_p3), %v2042_v2  ;;  %2053 = vmatpush3.bf16.msra.mxu1 (!%p367_p3), %v2042_v2  ;;  %p952_p10 = scmp.lt.s32.totalorder (!%p367_p3), %s2226_s27, 3  ;;  %p843_p11 = scmp.gt.s32.totalorder (!%p367_p3), %s2226_s27, 0 }
   0xe   : > { %2047 = vmatprep.subr.bf16.mxu0 (!%p367_p3), %v2042_v2  ;;  %s2244_s27 = smov (!%p367_p3), 8   ;;  %s2245_s25 = smov (!%p367_p3), 16  }
  0x10   : > { %s2785_s28 = smov (!%p450_p5, %s2230_s28), 1  ;;  %s2787_s17 = smov (!%p2333_p7, %s1906_s17), 15 }
  0x11   : > { %s467_s18 = scalar_select %p466_p6, %s1804_s16, 15 }
  0x12   : > { %s2330_s19 = sshll.u32 %s2785_s28, 5  ;;  %s2789_s21 = smov (!%p448_p8, %s1805_s21), 0 }
  0x13   : > { %s1815_s20 = sshll.u32 %s467_s18, 1  ;;  %s2791_s17 = smov (!%p2333_p7, %s2787_s17), 15 }
  0x14   : > { %s470_s22 = sadd.s32 %s1815_s20, %s2330_s19  ;;  %s2793_s21 = smov (!%p1806_p9, %s2789_s21), 15 }
  0x15   : > { %s2337_s24 = sshll.u32 %s470_s22, 3  ;;  %s1822_s12 = sshll.u32 %s2791_s17, 1 }
  0x16   : > { %s2343_s28 = scalar_lea.vmem %s2765_s1, %s2337_s24  ;;  %s484_s13 = sadd.s32 %s1822_s12, %s2330_s19 }
  0x17   : > { %v516_v3 = vld [vmem:[%s2343_s28] sm:$0xff]  ;;  %v517_v4 = vld [vmem:[%s2343_s28 + $0x8] sm:$0xff]  ;;  %v518_v5 = vld [vmem:[%s2343_s28 + $0x10] sm:$0xff]  ;;  %s1811_s14 = sshll.u32 %s2793_s21, 1  ;;  %s1824_s15 = sshll.u32 %s484_s13, 3 }
  0x18   : > { %1962 = vmatprep.mubr.msk.f32.mxu0 %vm530_vm0, %v516_v3  ;;  %v519_v6 = vld [vmem:[%s2343_s28 + $0x18] sm:$0xff]  ;;  %v520_v7 = vld [vmem:[%s2343_s28 + $0x20] sm:$0xff]  ;;  %v521_v8 = vld [vmem:[%s2343_s28 + $0x28] sm:$0xff]  ;;  %s456_s16 = sadd.s32 %s2330_s19, %s1811_s14  ;;  %s486_s22 = scalar_lea.vmem %s2766_s2, %s1824_s15 }
  0x19   : > { %1963 = vmatmul.mubr.msk.f32.vlgmr.msra.gmra.mrb[0].mxu0 %vm530_vm0, %v517_v4  ;;  %v522_v9 = vld [vmem:[%s2343_s28 + $0x30] sm:$0xff]  ;;  %s1813_s23 = sshll.u32 %s456_s16, 3  ;;  %v849_v10 = vld [vmem:[%s486_s22] sm:$0xff]  ;;  %v850_v11 = vld [vmem:[%s486_s22 + $0x8] sm:$0xff]  ;;  %s2709_s17 = scalar_lea.vmem %s2771_s7, %s2337_s24 }
  0x1a   : > { %2049 = vmatpush3.bf16.msra.mxu0 %v2042_v2  ;;  %1965 = vmatprep.mubr.msk.f32.mxu0 %vm530_vm0, %v518_v5  ;;  %s458_s26 = scalar_lea.vmem %s2764_s0, %s1813_s23  ;;  %v523_v12 = vld [vmem:[%s2343_s28 + $0x38] sm:$0xff]  ;;  %s2718_s21 = scalar_lea.vmem %s2772_s8, %s2337_s24 }
  0x1b   : > { %1985 = vmatprep.mubr.msk.f32.mxu1 %vm530_vm0, %v849_v10  ;;  %v740_v13 = vld [vmem:[%s458_s26] sm:$0xff]  ;;  %v741_v14 = vld [vmem:[%s458_s26 + $0x8] sm:$0xff]  ;;  %s2435_s18 = scalar_select %p952_p10, 1, 0 }
  0x1c   : > { %1986 = vmatmul.mubr.msk.f32.vlgmr.msra.gmra.mrb[0].mxu1 %vm530_vm0, %v850_v11  ;;  %s2441_s20 = scalar_select %p843_p11, 1, 0 }
  0x1d   : > { %1966 = vmatmul.mubr.msk.f32.gmra.mrb[2].mxu0 %vm530_vm0, %v519_v6  ;;  %s954_s22 = scvt.s32.f32 %s2435_s18 }
  0x1e   : > { %1968 = vmatprep.mubr.msk.f32.mxu0 %vm530_vm0, %v520_v7  ;;  %s845_s23 = scvt.s32.f32 %s2441_s20 }
  0x21   : > { %1969 = vmatmul.mubr.msk.f32.gmra.mrb[4].mxu0 %vm530_vm0, %v521_v8 }
  0x22   : > { %1971 = vmatprep.mubr.msk.f32.mxu0 %vm530_vm0, %v522_v9 }
  0x25   : > { %1972 = vmatmul.mubr.msk.f32.gmra.mrb[6].mxu0 %vm530_vm0, %v523_v12 }
  0x26   : > { %1978 = vmatprep.mubr.msk.f32.mxu0 %vm530_vm0, %v740_v13 }
  0x29   : > { %1979 = vmatmul.mubr.msk.f32.vlgmr.msra.gmra.mrb[8].mxu0 %vm530_vm0, %v741_v14 }
  0xec   : > { %v1964_v16 = vpop.f32.mrb[0].mxu0 }
  0xed   : > { %v2380_v17 = vadd.f32 %v1964_v16, %v1833_v15  ;;  %v621_v18 = vpop.f32.mrb[1].mxu0 }
  0xee   : > { %v2382_v19 = vadd.f32 %v1833_v15, %v621_v18 }
  0xef   : > { %v661_v20 = vmin.f32 %v2380_v17, 30.0  ;;  %v1987_v34 = vpop.f32.mrb[0].mxu1 }
  0xf0   : > { %v660_v21 = vmin.f32 %v2382_v19, 30.0  ;;  %v1967_v22 = vpop.f32.mrb[2].mxu0  ;;  %v2396_v37 = vadd.f32 %v1987_v34, %v1833_v15  ;;  %v923_v38 = vpop.f32.mrb[1].mxu1 }
  0xf1   : > { %v670_v23 = vmul.f32 1.442695, %v661_v20  ;;  %v2386_v24 = vadd.f32 %v1967_v22, %v1833_v15  ;;  %v631_v25 = vpop.f32.mrb[3].mxu0  ;;  %v2399_v40 = vadd.f32 %v1833_v15, %v923_v38  ;;  %v1858_v20 = vld [vmem:[%s2769_s5 + $0x18] sm:$0xff] }
  0xf2   : > { %v668_v26 = vmul.f32 1.442695, %v660_v21  ;;  %v2388_v27 = vadd.f32 %v1833_v15, %v631_v25  ;;  %v933_v43 = vmin.f32 %v2396_v37, 30.0  ;;  %v1859_v21 = vld [vmem:[%s2769_s5 + $0x20] sm:$0xff] }
  0xf3   : > { %2124 = vpow2.f32 %v670_v23  ;;  %v663_v28 = vmin.f32 %v2386_v24, 30.0  ;;  %v932_v47 = vmin.f32 %v2399_v40, 30.0 }
  0xf4   : > { %2126 = vpow2.f32 %v668_v26  ;;  %v662_v29 = vmin.f32 %v2388_v27, 30.0  ;;  %v1970_v30 = vpop.f32.mrb[4].mxu0  ;;  %v936_v50 = vmul.f32 1.442695, %v933_v43  ;;  %v2054_v26 = vpack.c.bf16 %v1859_v21, %v1858_v20 }
  0xf5   : > { %v674_v31 = vmul.f32 1.442695, %v663_v28  ;;  %v2392_v32 = vadd.f32 %v1970_v30, %v1833_v15  ;;  %v641_v33 = vpop.f32.mrb[5].mxu0  ;;  %v934_v52 = vmul.f32 1.442695, %v932_v47 }
  0xf6   : > { %v672_v35 = vmul.f32 1.442695, %v662_v29  ;;  %v2394_v36 = vadd.f32 %v1833_v15, %v641_v33  ;;  %2055 = vmatprep.subr.bf16.mxu0 %v2054_v26 }
  0xf7   : > { %2128 = vpow2.f32 %v674_v31  ;;  %v665_v39 = vmin.f32 %v2392_v32, 30.0  ;;  %2057 = vmatpush3.bf16.msra.mxu0 %v2054_v26 }
  0xf8   : > { %2130 = vpow2.f32 %v672_v35  ;;  %v664_v41 = vmin.f32 %v2394_v36, 30.0  ;;  %v1973_v42 = vpop.f32.mrb[6].mxu0 }
  0xf9   : > { %v678_v44 = vmul.f32 1.442695, %v665_v39  ;;  %v2403_v45 = vadd.f32 %v1973_v42, %v1833_v15  ;;  %v651_v46 = vpop.f32.mrb[7].mxu0 }
  0xfa   : > { %v676_v48 = vmul.f32 1.442695, %v664_v41  ;;  %v2406_v49 = vadd.f32 %v1833_v15, %v651_v46  ;;  %v1860_v46 = vld [vmem:[%s2769_s5 + $0x28] sm:$0xff] }
  0xfb   : > { %2132 = vpow2.f32 %v678_v44  ;;  %v667_v51 = vmin.f32 %v2403_v45, 30.0  ;;  %1992 = vmatprep.subr.mxu0 %v1860_v46 }
  0xfc   : > { %2134 = vpow2.f32 %v676_v48  ;;  %v666_v53 = vmin.f32 %v2406_v49, 30.0  ;;  %v1980_v54 = vpop.f32.mrb[8].mxu0  ;;  %1993 = vmatpush3.msra.mxu0 %v1860_v46 }
  0xfd   : > { %v2125_v55 = vpop.eup %2124  ;;  %v682_v56 = vmul.f32 1.442695, %v667_v51  ;;  %2136 = vpow2.f32 %v936_v50  ;;  %v2410_v57 = vadd.f32 %v1980_v54, %v1833_v15  ;;  %v814_v58 = vpop.f32.mrb[9].mxu0 }
  0xfe   : > { %v2127_v59 = vpop.eup %2126  ;;  %v685_v60 = vadd.f32 1.0, %v2125_v55  ;;  %v680_v61 = vmul.f32 1.442695, %v666_v53  ;;  %2138 = vpow2.f32 %v934_v52  ;;  %v2412_v62 = vadd.f32 %v1833_v15, %v814_v58 }
  0xff   : > { %v684_v63 = vadd.f32 1.0, %v2127_v59  ;;  %2140 = vpow2.f32 %v682_v56  ;;  %v824_v0 = vmin.f32 %v2410_v57, 30.0 }
 0x100   : > { %v693_v1 = vmul.f32 %v685_v60, %v685_v60  ;;  %2142 = vpow2.f32 %v680_v61  ;;  %v823_v2 = vmin.f32 %v2412_v62, 30.0 }
 0x101   : > { %v2129_v3 = vpop.eup %2128  ;;  %v692_v4 = vmul.f32 %v684_v63, %v684_v63  ;;  %v827_v5 = vmul.f32 1.442695, %v824_v0 }
 0x102   : > { %v2131_v6 = vpop.eup %2130  ;;  %v709_v7 = vadd.f32 1.0, %v693_v1  ;;  %v687_v8 = vadd.f32 1.0, %v2129_v3  ;;  %v825_v9 = vmul.f32 1.442695, %v823_v2  ;;  %v1843_v51 = vadd.f32 -1.0, %v693_v1 }
 0x103   : > { %v708_v10 = vadd.f32 1.0, %v692_v4  ;;  %v686_v11 = vadd.f32 1.0, %v2131_v6  ;;  %2144 = vpow2.f32 %v827_v5  ;;  %v1842_v55 = vadd.f32 -1.0, %v692_v4 }
 0x104   : > { %2146 = vrcp.f32 %v709_v7  ;;  %v695_v12 = vmul.f32 %v687_v8, %v687_v8 }
 0x105   : > { %v2133_v13 = vpop.eup %2132  ;;  %2148 = vrcp.f32 %v708_v10  ;;  %v694_v14 = vmul.f32 %v686_v11, %v686_v11 }
 0x106   : > { %v2135_v15 = vpop.eup %2134  ;;  %v711_v16 = vadd.f32 1.0, %v695_v12  ;;  %v689_v18 = vadd.f32 1.0, %v2133_v13  ;;  %2150 = vpow2.f32 %v825_v9  ;;  %v1845_v1 = vadd.f32 -1.0, %v695_v12 }
 0x107   : > { %v2137_v22 = vpop.eup %2136  ;;  %v710_v23 = vadd.f32 1.0, %v694_v14  ;;  %v688_v25 = vadd.f32 1.0, %v2135_v15  ;;  %v1844_v4 = vadd.f32 -1.0, %v694_v14 }
 0x108   : > { %v2139_v28 = vpop.eup %2138  ;;  %2152 = vrcp.f32 %v711_v16  ;;  %v697_v29 = vmul.f32 %v689_v18, %v689_v18  ;;  %v939_v30 = vadd.f32 1.0, %v2137_v22 }
 0x109   : > { %v2141_v31 = vpop.eup %2140  ;;  %2154 = vrcp.f32 %v710_v23  ;;  %v696_v33 = vmul.f32 %v688_v25, %v688_v25  ;;  %v938_v34 = vadd.f32 1.0, %v2139_v28 }
 0x10a   : > { %v2143_v35 = vpop.eup %2142  ;;  %v713_v38 = vadd.f32 1.0, %v697_v29  ;;  %v691_v39 = vadd.f32 1.0, %v2141_v31  ;;  %v941_v41 = vmul.f32 %v939_v30, %v939_v30  ;;  %v1847_v8 = vadd.f32 -1.0, %v697_v29 }
 0x10b   : > { %v712_v42 = vadd.f32 1.0, %v696_v33  ;;  %v690_v43 = vadd.f32 1.0, %v2143_v35  ;;  %v940_v44 = vmul.f32 %v938_v34, %v938_v34  ;;  %v1846_v9 = vadd.f32 -1.0, %v696_v33 }
 0x10c   : > { %2156 = vrcp.f32 %v713_v38  ;;  %v2426_v47 = vmul.f32 %v691_v39, %v691_v39  ;;  %v945_v48 = vadd.f32 1.0, %v941_v41  ;;  %v1857_v20 = vadd.f32 -1.0, %v941_v41 }
 0x10d   : > { %v2145_v50 = vpop.eup %2144  ;;  %2158 = vrcp.f32 %v712_v42  ;;  %v2429_v52 = vmul.f32 %v690_v43, %v690_v43  ;;  %v944_v53 = vadd.f32 1.0, %v940_v44  ;;  %v1856_v26 = vadd.f32 -1.0, %v940_v44 }
 0x10e   : > { %v2147_v54 = vpop.eup %2146  ;;  %v715_v56 = vadd.f32 1.0, %v2426_v47  ;;  %2160 = vrcp.f32 %v945_v48  ;;  %v830_v58 = vadd.f32 1.0, %v2145_v50  ;;  %v955_v33 = vstv %s954_s22 }
 0x10f   : > { %v2149_v59 = vpop.eup %2148  ;;  %v719_v60 = vmul.f32 %v2147_v54, %v1843_v51  ;;  %v714_v61 = vadd.f32 1.0, %v2429_v52  ;;  %2162 = vrcp.f32 %v944_v53  ;;  %v1849_v35 = vadd.f32 -1.0, %v2426_v47  ;;  %v1142_v54 = vld [vmem:[%s2769_s5 + $0x8] sm:$0xff] }
 0x110   : > { %v2151_v63 = vpop.eup %2150  ;;  %v717_v0 = vmul.f32 %v2149_v59, %v1842_v55  ;;  %2164 = vrcp.f32 %v715_v56  ;;  %v2437_v2 = vmul.f32 %v830_v58, %v830_v58  ;;  %v2475_v38 = vstv %s845_s23 }
 0x111   : > { %v733_v3 = vmul.f32 %v719_v60, %v2380_v17  ;;  %2166 = vrcp.f32 %v714_v61  ;;  %v829_v5 = vadd.f32 1.0, %v2151_v63  ;;  %v1848_v47 = vadd.f32 -1.0, %v2429_v52 }
 0x112   : > { %v2153_v6 = vpop.eup %2152  ;;  %v2445_v7 = vmul.f32 %v717_v0, %v2382_v19  ;;  %v836_v10 = vadd.f32 1.0, %v2437_v2 }
 0x113   : > { %v2155_v11 = vpop.eup %2154  ;;  %v975_v12 = vrot.slane %v733_v3, 7  ;;  %v723_v13 = vmul.f32 %v2153_v6, %v1845_v1  ;;  %v2448_v15 = vmul.f32 %v829_v5, %v829_v5  ;;  %1044 = vrot.lane.b32.xlu1 %v733_v3, %s2244_s27  ;;  %v1012_v17 = vrot.slane %v733_v3, 1 }
 0x114   : > { %v974_v14 = vrot.slane %v2445_v7, 7  ;;  %v721_v16 = vmul.f32 %v2155_v11, %v1844_v4  ;;  %2168 = vrcp.f32 %v836_v10  ;;  %1042 = vrot.lane.b32.xlu0 %v2445_v7, %s2244_s27  ;;  %v1011_v19 = vrot.slane %v2445_v7, 1 }
 0x115   : > { %v2458_v18 = vmul.f32 %v723_v13, %v2386_v24  ;;  %v835_v21 = vadd.f32 1.0, %v2448_v15  ;;  %v1033_v22 = vsel %vm1007_vm1, %v1012_v17, 0.0  ;;  %v1853_v1 = vadd.f32 -1.0, %v2437_v2 }
 0x116   : > { %v2157_v23 = vpop.eup %2156  ;;  %v2463_v25 = vmul.f32 %v721_v16, %v2388_v27  ;;  %v1013_v28 = vsel %vm1007_vm1, %v1011_v19, %v1012_v17  ;;  %v2469_v29 = vsel %vm970_vm2, %v974_v14, %v975_v12  ;;  %v1852_v11 = vadd.f32 -1.0, %v2448_v15 }
 0x117   : > { %v2159_v30 = vpop.eup %2158  ;;  %v727_v24 = vmul.f32 %v2157_v23, %v1847_v8  ;;  %2170 = vrcp.f32 %v835_v21  ;;  %1086 = vrot.lane.b32.xlu1 %v1033_v22, %s2245_s25  ;;  %v1015_v31 = vrot.slane %v2458_v18, 1  ;;  %v978_v42 = vrot.slane %v2458_v18, 7 }
 0x118   : > { %v2161_v34 = vpop.eup %2160  ;;  %v725_v27 = vmul.f32 %v2159_v30, %v1846_v9  ;;  %1084 = vrot.lane.b32.xlu0 %v1013_v28, %s2245_s25  ;;  %v1014_v39 = vrot.slane %v2463_v25, 1  ;;  %v977_v46 = vrot.slane %v2463_v25, 7  ;;  %v1877_v28 = vld [vmem:[%s2769_s5 + $0x30] sm:$0xff] }
 0x119   : > { %v2163_v41 = vpop.eup %2162  ;;  %v2480_v43 = vmul.f32 %v727_v24, %v2392_v32  ;;  %v949_v44 = vmul.f32 %v2161_v34, %v1857_v20  ;;  %v1141_v32 = vld [vmem:[%s2769_s5] sm:$0xff] }
 0x11a   : > { %v2165_v48 = vpop.eup %2164  ;;  %v2484_v50 = vmul.f32 %v725_v27, %v2394_v36  ;;  %v947_v51 = vmul.f32 %v2163_v41, %v1856_v26  ;;  %v2490_v53 = vsel %vm1007_vm1, %v1014_v39, %v1015_v31  ;;  %v2058_v63 = vpack.c.bf16 %v1142_v54, %v1141_v32 }
 0x11b   : > { %v2167_v55 = vpop.eup %2166  ;;  %v981_v36 = vrot.slane %v2480_v43, 7  ;;  %v731_v56 = vmul.f32 %v2165_v48, %v1849_v35  ;;  %v951_v52 = vmul.f32 %v949_v44, %v2396_v37  ;;  %v1018_v58 = vrot.slane %v2480_v43, 1 }
 0x11c   : > { %v729_v59 = vmul.f32 %v2167_v55, %v1848_v47  ;;  %v950_v60 = vmul.f32 %v947_v51, %v2399_v40  ;;  %v1017_v61 = vrot.slane %v2484_v50, 1  ;;  %v2512_v4 = vsel %vm970_vm2, %v977_v46, %v978_v42  ;;  %2059 = vmatprep.subr.bf16.mxu1 %v2058_v63 }
 0x11d   : > { %v2504_v0 = vmul.f32 %v731_v56, %v2403_v45  ;;  %v2507_v3 = vmul.f32 %v955_v33, %v951_v52  ;;  %v980_v45 = vrot.slane %v2484_v50, 7  ;;  %2061 = vmatpush3.bf16.msra.mxu1 %v2058_v63  ;;  %v1035_v51 = vsel %vm1007_vm1, %v1018_v58, 0.0 }
 0x11e   : > { %v2169_v37 = vpop.eup %2168  ;;  %v2515_v5 = vmul.f32 %v729_v59, %v2406_v49  ;;  %v1019_v40 = vsel %vm1007_vm1, %v1017_v61, %v1018_v58  ;;  %v2520_v6 = vmul.f32 %v955_v33, %v950_v60  ;;  %v1143_v49 = vld [vmem:[%s2769_s5 + $0x10] sm:$0xff]  ;;  %v1002_v32 = vsel %vm970_vm2, 0.0, %v974_v14 }
 0x11f   : > { %v984_v2 = vrot.slane %v2504_v0, 7  ;;  %v840_v8 = vmul.f32 %v2169_v37, %v1853_v1  ;;  %v1021_v9 = vrot.slane %v2504_v0, 1  ;;  %v1024_v10 = vrot.slane %v2507_v3, 1  ;;  %2010 = vmatprep.subr.mxu1 %v1143_v49  ;;  %v1879_v37 = vld [vmem:[%s2769_s5 + $0x40] sm:$0xff] }
 0x120   : > { %v1020_v12 = vrot.slane %v2515_v5, 1  ;;  %v1023_v13 = vrot.slane %v2520_v6, 1  ;;  %v2535_v17 = vsel %vm970_vm2, %v980_v45, %v981_v36  ;;  %v983_v20 = vrot.slane %v2515_v5, 7 }
 0x121   : > { %v2171_v16 = vpop.eup %2170  ;;  %v842_v19 = vmul.f32 %v840_v8, %v2410_v57  ;;  %v986_v23 = vrot.slane %v2520_v6, 7  ;;  %2011 = vmatpush3.msra.mxu1 %v1143_v49  ;;  %v1878_v57 = vld [vmem:[%s2769_s5 + $0x38] sm:$0xff]  ;;  %v987_v24 = vrot.slane %v2507_v3, 7 }
 0x122   : > { %v838_v21 = vmul.f32 %v2171_v16, %v1852_v11  ;;  %v1022_v22 = vsel %vm1007_vm1, %v1020_v12, %v1021_v9  ;;  %v1025_v15 = vsel %vm1007_vm1, %v1023_v13, %v1024_v10  ;;  %v2552_v30 = vsel %vm970_vm2, %v983_v20, %v984_v2 }
 0x123   : > { %v848_v26 = vmul.f32 %v2475_v38, %v842_v19  ;;  %v2556_v34 = vpack.c.bf16 %v1878_v57, %v1877_v28  ;;  %v2562_v35 = vsel %vm970_vm2, %v986_v23, %v987_v24  ;;  %v1004_v12 = vsel %vm970_vm2, 0.0, %v980_v45 }
 0x124   : > { %v841_v33 = vmul.f32 %v838_v21, %v2412_v62 }
 0x125   : > { %1040 = vrot.lane.b32.xlu0 %v848_v26, %s2244_s27  ;;  %v1009_v27 = vrot.slane %v848_v26, 1  ;;  %v972_v41 = vrot.slane %v848_v26, 7  ;;  %2063 = vmatprep.subr.bf16.mxu1 %v2556_v34 }
 0x126   : > { %v847_v39 = vmul.f32 %v2475_v38, %v841_v33  ;;  %v1034_v38 = vsel %vm1007_vm1, %v1015_v31, 0.0  ;;  %v1037_v31 = vsel %vm1007_vm1, %v1024_v10, 0.0 }
 0x127   : > { %v1032_v42 = vsel %vm1007_vm1, %v1009_v27, 0.0 }
 0x128   : > { %1082 = vrot.lane.b32.xlu1 %v1032_v42, %s2245_s25  ;;  %v1008_v62 = vrot.slane %v847_v39, 1  ;;  %v971_v44 = vrot.slane %v847_v39, 7 }
 0x129   : > { %1038 = vrot.lane.b32.xlu0 %v847_v39, %s2244_s27 }
 0x12a   : > { %v1010_v48 = vsel %vm1007_vm1, %v1008_v62, %v1009_v27  ;;  %v973_v47 = vsel %vm970_vm2, %v971_v44, %v972_v41  ;;  %v1001_v14 = vsel %vm970_vm2, 0.0, %v971_v44 }
 0x12c   : > { %1080 = vrot.lane.b32.xlu1 %v1010_v48, %s2245_s25 }
 0x12d   : > { %1046 = vrot.lane.b32.xlu0 %v2463_v25, %s2244_s27 }
 0x130   : > { %1048 = vrot.lane.b32.xlu1 %v2458_v18, %s2244_s27  ;;  %v1036_v18 = vsel %vm1007_vm1, %v1021_v9, 0.0 }
 0x131   : > { %1088 = vrot.lane.b32.xlu0 %v2490_v53, %s2245_s25 }
 0x134   : > { %1090 = vrot.lane.b32.xlu1 %v1034_v38, %s2245_s25 }
 0x135   : > { %1050 = vrot.lane.b32.xlu0 %v2484_v50, %s2244_s27  ;;  %v1005_v50 = vsel %vm970_vm2, 0.0, %v983_v20  ;;  %v1006_v20 = vsel %vm970_vm2, 0.0, %v986_v23 }
 0x138   : > { %1052 = vrot.lane.b32.xlu1 %v2480_v43, %s2244_s27 }
 0x139   : > { %1092 = vrot.lane.b32.xlu0 %v1019_v40, %s2245_s25  ;;  %v1003_v40 = vsel %vm970_vm2, 0.0, %v977_v46 }
 0x13c   : > { %1094 = vrot.lane.b32.xlu1 %v1035_v51, %s2245_s25 }
 0x13d   : > { %1054 = vrot.lane.b32.xlu0 %v2515_v5, %s2244_s27 }
 0x140   : > { %1056 = vrot.lane.b32.xlu1 %v2504_v0, %s2244_s27 }
 0x141   : > { %1096 = vrot.lane.b32.xlu0 %v1022_v22, %s2245_s25 }
 0x144   : > { %1098 = vrot.lane.b32.xlu1 %v1036_v18, %s2245_s25 }
 0x145   : > { %1058 = vrot.lane.b32.xlu0 %v2520_v6, %s2244_s27 }
 0x148   : > { %1060 = vrot.lane.b32.xlu1 %v2507_v3, %s2244_s27 }
 0x149   : > { %1100 = vrot.lane.b32.xlu0 %v1025_v15, %s2245_s25 }
 0x14c   : > { %1102 = vrot.lane.b32.xlu1 %v1037_v31, %s2245_s25  ;;  %v1888_v31 = vld [vmem:[%s2770_s6] ss:$0 sm:$0xff] }
 0x185   : > { %v1045_v43 = vpop.permute.xlu1 %1044 }
 0x186   : > { %v1043_v53 = vpop.permute.xlu0 %1042  ;;  %v1120_v56 = vsel %vm1116_vm3, %v2469_v29, %v1045_v43 }
 0x187   : > { %v1119_v55 = vsel %vm1116_vm3, %v1002_v32, %v1043_v53 }
 0x189   : > { %v1087_v54 = vpop.permute.xlu1 %1086 }
 0x18a   : > { %v1085_v36 = vpop.permute.xlu0 %1084  ;;  %v1132_v58 = vsel %vm530_vm0, %v1120_v56, %v1087_v54 }
 0x18b   : > { %v1131_v52 = vsel %vm530_vm0, %v1119_v55, %v1085_v36 }
 0x18c   : > { %1994 = vmatprep.mubr.msk.f32.mxu0 %vm1148_vm4, %v1131_v52 }
 0x18d   : > { %1995 = vmatmul.mubr.msk.f32.vlgmr.msra.gmra.mrb[10].mxu0 %vm1148_vm4, %v1132_v58 }
 0x197   : > { %v1041_v59 = vpop.permute.xlu0 %1040 }
 0x198   : > { %v1118_v0 = vsel %vm1116_vm3, %v973_v47, %v1041_v59 }
 0x19a   : > { %v1083_v7 = vpop.permute.xlu1 %1082 }
 0x19b   : > { %v1039_v60 = vpop.permute.xlu0 %1038  ;;  %v1130_v3 = vsel %vm530_vm0, %v1118_v0, %v1083_v7 }
 0x19c   : > { %v1117_v61 = vsel %vm1116_vm3, %v1001_v14, %v1039_v60 }
 0x19e   : > { %v1081_v63 = vpop.permute.xlu1 %1080 }
 0x19f   : > { %v1129_v29 = vsel %vm530_vm0, %v1117_v61, %v1081_v63  ;;  %v1047_v1 = vpop.permute.xlu0 %1046 }
 0x1a0   : > { %2012 = vmatprep.mubr.msk.f32.mxu1 %vm1148_vm4, %v1129_v29  ;;  %v1121_v8 = vsel %vm1116_vm3, %v1003_v40, %v1047_v1 }
 0x1a1   : > { %2013 = vmatmul.mubr.msk.f32.vlgmr.msra.gmra.mrb[2].mxu1 %vm1148_vm4, %v1130_v3 }
 0x1a2   : > { %v1049_v2 = vpop.permute.xlu1 %1048  ;;  %2015 = vmatprep.mubr.msk.f32.mxu1 %vm1148_vm4, %v1131_v52  ;;  %2065 = vmatpush3.bf16.msra.mxu1 %v2556_v34 }
 0x1a3   : > { %v1089_v9 = vpop.permute.xlu0 %1088  ;;  %2028 = vmatprep.subr.mxu1 %v1879_v37  ;;  %v1122_v25 = vsel %vm1116_vm3, %v2512_v4, %v1049_v2 }
 0x1a4   : > { %v1133_v10 = vsel %vm530_vm0, %v1121_v8, %v1089_v9 }
 0x1a5   : > { %1997 = vmatprep.mubr.msk.f32.mxu0 %vm1148_vm4, %v1133_v10  ;;  %2016 = vmatmul.mubr.msk.f32.gmra.mrb[4].mxu1 %vm1148_vm4, %v1132_v58 }
 0x1a6   : > { %v1091_v49 = vpop.permute.xlu1 %1090  ;;  %2018 = vmatprep.mubr.msk.f32.mxu1 %vm1148_vm4, %v1133_v10  ;;  %2029 = vmatpush3.msra.mxu1 %v1879_v37 }
 0x1a7   : > { %v1134_v46 = vsel %vm530_vm0, %v1122_v25, %v1091_v49  ;;  %v1051_v11 = vpop.permute.xlu0 %1050 }
 0x1a8   : > { %1998 = vmatmul.mubr.msk.f32.gmra.mrb[12].mxu0 %vm1148_vm4, %v1134_v46  ;;  %v1123_v16 = vsel %vm1116_vm3, %v1004_v12, %v1051_v11 }
 0x1a9   : > { %2019 = vmatmul.mubr.msk.f32.gmra.mrb[6].mxu1 %vm1148_vm4, %v1134_v46 }
 0x1aa   : > { %v1053_v13 = vpop.permute.xlu1 %1052 }
 0x1ab   : > { %v1093_v19 = vpop.permute.xlu0 %1092  ;;  %v1124_v21 = vsel %vm1116_vm3, %v2535_v17, %v1053_v13 }
 0x1ac   : > { %v1135_v4 = vsel %vm530_vm0, %v1123_v16, %v1093_v19 }
 0x1ad   : > { %2000 = vmatprep.mubr.msk.f32.mxu0 %vm1148_vm4, %v1135_v4  ;;  %2021 = vmatprep.mubr.msk.f32.mxu1 %vm1148_vm4, %v1135_v4 }
 0x1ae   : > { %v1095_v22 = vpop.permute.xlu1 %1094 }
 0x1af   : > { %v1136_v15 = vsel %vm530_vm0, %v1124_v21, %v1095_v22  ;;  %v1055_v26 = vpop.permute.xlu0 %1054 }
 0x1b0   : > { %2001 = vmatmul.mubr.msk.f32.gmra.mrb[14].mxu0 %vm1148_vm4, %v1136_v15  ;;  %2022 = vmatmul.mubr.msk.f32.gmra.mrb[8].mxu1 %vm1148_vm4, %v1136_v15  ;;  %v1125_v28 = vsel %vm1116_vm3, %v1005_v50, %v1055_v26 }
 0x1b1   : > { %2030 = vmatprep.mubr.msk.f32.mxu1 %vm1148_vm4, %v1133_v10 }
 0x1b2   : > { %v1057_v45 = vpop.permute.xlu1 %1056 }
 0x1b3   : > { %v1097_v57 = vpop.permute.xlu0 %1096  ;;  %v1126_v24 = vsel %vm1116_vm3, %v2552_v30, %v1057_v45 }
 0x1b4   : > { %v1137_v17 = vsel %vm530_vm0, %v1125_v28, %v1097_v57  ;;  %2031 = vmatmul.mubr.msk.f32.vlgmr.msra.gmra.mrb[2].mxu1 %vm1148_vm4, %v1134_v46 }
 0x1b5   : > { %2003 = vmatprep.mubr.msk.f32.mxu0 %vm1148_vm4, %v1137_v17  ;;  %2033 = vmatprep.mubr.msk.f32.mxu1 %vm1148_vm4, %v1135_v4 }
 0x1b6   : > { %v1099_v33 = vpop.permute.xlu1 %1098 }
 0x1b7   : > { %v1138_v5 = vsel %vm530_vm0, %v1126_v24, %v1099_v33  ;;  %v1059_v34 = vpop.permute.xlu0 %1058 }
 0x1b8   : > { %2004 = vmatmul.mubr.msk.f32.gmra.mrb[16].mxu0 %vm1148_vm4, %v1138_v5  ;;  %2034 = vmatmul.mubr.msk.f32.gmra.mrb[4].mxu1 %vm1148_vm4, %v1136_v15  ;;  %v1127_v39 = vsel %vm1116_vm3, %v1006_v20, %v1059_v34 }
 0x1b9   : > { %2036 = vmatprep.mubr.msk.f32.mxu1 %vm1148_vm4, %v1137_v17 }
 0x1ba   : > { %v1061_v27 = vpop.permute.xlu1 %1060 }
 0x1bb   : > { %v1101_v41 = vpop.permute.xlu0 %1100  ;;  %v1128_v42 = vsel %vm1116_vm3, %v2562_v35, %v1061_v27 }
 0x1bc   : > { %v1139_v30 = vsel %vm530_vm0, %v1127_v39, %v1101_v41  ;;  %2037 = vmatmul.mubr.msk.f32.gmra.mrb[6].mxu1 %vm1148_vm4, %v1138_v5 }
 0x1bd   : > { %2039 = vmatprep.mubr.msk.f32.mxu1 %vm1148_vm4, %v1139_v30 }
 0x1be   : > { %v1103_v62 = vpop.permute.xlu1 %1102 }
 0x1bf   : > { %v1140_v44 = vsel %vm530_vm0, %v1128_v42, %v1103_v62 }
 0x1c0   : > { %2040 = vmatmul.mubr.msk.f32.gmra.mrb[8].mxu1 %vm1148_vm4, %v1140_v44 }
 0x260   : > { %v1996_v6 = vpop.f32.mrb[10].mxu0 }
 0x261   : > { %v1239_v23 = vpop.f32.mrb[11].mxu0 }
 0x27b   : > { %v1999_v48 = vpop.f32.mrb[12].mxu0 }
 0x27c   : > { %v1249_v47 = vpop.f32.mrb[13].mxu0 }
 0x283   : > { %v2002_v38 = vpop.f32.mrb[14].mxu0 }
 0x284   : > { %v1259_v51 = vpop.f32.mrb[15].mxu0 }
 0x287   : > { %v2032_v18 = vpop.f32.mrb[2].mxu1 }
 0x288   : > { %v2066_v43 = vadd.f32 %v2032_v18, %v1996_v6  ;;  %v1465_v53 = vpop.f32.mrb[3].mxu1 }
 0x289   : > { %v2067_v32 = vadd.f32 %v1465_v53, %v1239_v23 }
 0x28a   : > { %v2681_v35 = vadd.f32 %v2066_v43, %v1888_v31 }
 0x28b   : > { %v2683_v54 = vadd.f32 %v2067_v32, %v1888_v31  ;;  %v2005_v55 = vpop.f32.mrb[16].mxu0  ;;  %v2035_v36 = vpop.f32.mrb[4].mxu1 }
 0x28c   : > { %v1528_v56 = vmin.f32 %v2681_v35, 30.0  ;;  %v2068_v52 = vadd.f32 %v2035_v36, %v1999_v48  ;;  %v1269_v58 = vpop.f32.mrb[17].mxu0  ;;  %v1475_v59 = vpop.f32.mrb[5].mxu1 }
 0x28d   : > { %v1527_v7 = vmin.f32 %v2683_v54, 30.0  ;;  %v2069_v60 = vadd.f32 %v1475_v59, %v1249_v47 }
 0x28e   : > { %v1537_v14 = vmul.f32 1.442695, %v1528_v56  ;;  %v2687_v61 = vadd.f32 %v2068_v52, %v1888_v31 }
 0x28f   : > { %v1535_v63 = vmul.f32 1.442695, %v1527_v7  ;;  %v2689_v0 = vadd.f32 %v2069_v60, %v1888_v31  ;;  %v2038_v29 = vpop.f32.mrb[6].mxu1 }
 0x290   : > { %2172 = vpow2.f32 %v1537_v14  ;;  %v1530_v1 = vmin.f32 %v2687_v61, 30.0  ;;  %v2070_v3 = vadd.f32 %v2038_v29, %v2002_v38  ;;  %v1485_v37 = vpop.f32.mrb[7].mxu1 }
 0x291   : > { %2174 = vpow2.f32 %v1535_v63  ;;  %v1529_v40 = vmin.f32 %v2689_v0, 30.0  ;;  %v2071_v2 = vadd.f32 %v1485_v37, %v1259_v51 }
 0x292   : > { %v1541_v8 = vmul.f32 1.442695, %v1530_v1  ;;  %v2693_v9 = vadd.f32 %v2070_v3, %v1888_v31  ;;  %v1608_v1 = vld [vmem:[%s2709_s17 + $0x8] sm:$0xff] }
 0x293   : > { %v1539_v10 = vmul.f32 1.442695, %v1529_v40  ;;  %v2695_v25 = vadd.f32 %v2071_v2, %v1888_v31  ;;  %v2041_v49 = vpop.f32.mrb[8].mxu1  ;;  %v1607_v40 = vld [vmem:[%s2709_s17] sm:$0xff] }
 0x294   : > { %2176 = vpow2.f32 %v1541_v8  ;;  %v1532_v46 = vmin.f32 %v2693_v9, 30.0  ;;  %v2072_v11 = vadd.f32 %v2041_v49, %v2005_v55  ;;  %v1495_v12 = vpop.f32.mrb[9].mxu1 }
 0x295   : > { %2178 = vpow2.f32 %v1539_v10  ;;  %v1531_v13 = vmin.f32 %v2695_v25, 30.0  ;;  %v2073_v16 = vadd.f32 %v1495_v12, %v1269_v58 }
 0x296   : > { %v1545_v19 = vmul.f32 1.442695, %v1532_v46  ;;  %v2699_v4 = vadd.f32 %v2072_v11, %v1888_v31 }
 0x297   : > { %v1543_v21 = vmul.f32 1.442695, %v1531_v13  ;;  %v2701_v22 = vadd.f32 %v2073_v16, %v1888_v31  ;;  %v1610_v13 = vld [vmem:[%s2709_s17 + $0x18] sm:$0xff] }
 0x298   : > { %2180 = vpow2.f32 %v1545_v19  ;;  %v1534_v15 = vmin.f32 %v2699_v4, 30.0 }
 0x299   : > { %2182 = vpow2.f32 %v1543_v21  ;;  %v1533_v26 = vmin.f32 %v2701_v22, 30.0  ;;  %v1609_v21 = vld [vmem:[%s2709_s17 + $0x10] sm:$0xff] }
 0x29a   : > { %v2173_v50 = vpop.eup %2172  ;;  %v1549_v45 = vmul.f32 1.442695, %v1534_v15 }
 0x29b   : > { %v2175_v28 = vpop.eup %2174  ;;  %v1552_v57 = vadd.f32 1.0, %v2173_v50  ;;  %v1547_v17 = vmul.f32 1.442695, %v1533_v26 }
 0x29c   : > { %v1551_v24 = vadd.f32 1.0, %v2175_v28  ;;  %2184 = vpow2.f32 %v1549_v45 }
 0x29d   : > { %v1560_v33 = vmul.f32 %v1552_v57, %v1552_v57  ;;  %2186 = vpow2.f32 %v1547_v17 }
 0x29e   : > { %v2177_v5 = vpop.eup %2176  ;;  %v1559_v34 = vmul.f32 %v1551_v24, %v1551_v24  ;;  %v1612_v24 = vld [vmem:[%s2709_s17 + $0x28] sm:$0xff] }
 0x29f   : > { %v2179_v20 = vpop.eup %2178  ;;  %v1576_v27 = vadd.f32 1.0, %v1560_v33  ;;  %v1554_v39 = vadd.f32 1.0, %v2177_v5  ;;  %v1890_v52 = vadd.f32 -1.0, %v1560_v33  ;;  %v1611_v5 = vld [vmem:[%s2709_s17 + $0x20] sm:$0xff] }
 0x2a0   : > { %v1575_v41 = vadd.f32 1.0, %v1559_v34  ;;  %v1553_v30 = vadd.f32 1.0, %v2179_v20  ;;  %v1889_v7 = vadd.f32 -1.0, %v1559_v34 }
 0x2a1   : > { %2188 = vrcp.f32 %v1576_v27  ;;  %v1562_v42 = vmul.f32 %v1554_v39, %v1554_v39 }
 0x2a2   : > { %v2181_v62 = vpop.eup %2180  ;;  %2190 = vrcp.f32 %v1575_v41  ;;  %v1561_v44 = vmul.f32 %v1553_v30, %v1553_v30 }
 0x2a3   : > { %v2183_v6 = vpop.eup %2182  ;;  %v1578_v23 = vadd.f32 1.0, %v1562_v42  ;;  %v1556_v48 = vadd.f32 1.0, %v2181_v62  ;;  %v1892_v2 = vadd.f32 -1.0, %v1562_v42  ;;  %v1614_v62 = vld [vmem:[%s2709_s17 + $0x38] sm:$0xff] }
 0x2a4   : > { %v1577_v47 = vadd.f32 1.0, %v1561_v44  ;;  %v1555_v38 = vadd.f32 1.0, %v2183_v6  ;;  %v1891_v49 = vadd.f32 -1.0, %v1561_v44  ;;  %v1613_v6 = vld [vmem:[%s2709_s17 + $0x30] sm:$0xff] }
 0x2a5   : > { %2192 = vrcp.f32 %v1578_v23  ;;  %v1564_v51 = vmul.f32 %v1556_v48, %v1556_v48 }
 0x2a6   : > { %v2185_v18 = vpop.eup %2184  ;;  %2194 = vrcp.f32 %v1577_v47  ;;  %v1563_v31 = vmul.f32 %v1555_v38, %v1555_v38 }
 0x2a7   : > { %v2187_v43 = vpop.eup %2186  ;;  %v1580_v53 = vadd.f32 1.0, %v1564_v51  ;;  %v1558_v32 = vadd.f32 1.0, %v2185_v18  ;;  %v1894_v15 = vadd.f32 -1.0, %v1564_v51 }
 0x2a8   : > { %v1579_v55 = vadd.f32 1.0, %v1563_v31  ;;  %v1557_v36 = vadd.f32 1.0, %v2187_v43  ;;  %v1893_v50 = vadd.f32 -1.0, %v1563_v31 }
 0x2a9   : > { %2196 = vrcp.f32 %v1580_v53  ;;  %v1566_v56 = vmul.f32 %v1558_v32, %v1558_v32 }
 0x2aa   : > { %2198 = vrcp.f32 %v1579_v55  ;;  %v1565_v58 = vmul.f32 %v1557_v36, %v1557_v36 }
 0x2ab   : > { %v2189_v59 = vpop.eup %2188  ;;  %v1582_v60 = vadd.f32 1.0, %v1566_v56  ;;  %v1896_v34 = vadd.f32 -1.0, %v1566_v56 }
 0x2ac   : > { %v2191_v14 = vpop.eup %2190  ;;  %v1586_v63 = vmul.f32 %v2189_v59, %v1890_v52  ;;  %v1581_v29 = vadd.f32 1.0, %v1565_v58  ;;  %v1895_v27 = vadd.f32 -1.0, %v1565_v58 }
 0x2ad   : > { %v1584_v3 = vmul.f32 %v2191_v14, %v1889_v7  ;;  %2200 = vrcp.f32 %v1582_v60 }
 0x2ae   : > { %v1600_v37 = vmul.f32 %v1586_v63, %v2681_v35  ;;  %2202 = vrcp.f32 %v1581_v29 }
 0x2af   : > { %v2193_v8 = vpop.eup %2192  ;;  %v1599_v10 = vmul.f32 %v1584_v3, %v2683_v54 }
 0x2b0   : > { %v2195_v46 = vpop.eup %2194  ;;  %v1616_v11 = vadd.f32 %v1608_v1, %v1600_v37  ;;  %v1590_v12 = vmul.f32 %v2193_v8, %v1892_v2 }
 0x2b1   : > { %v1615_v35 = vadd.f32 %v1607_v40, %v1599_v10  ;;  %v1588_v16 = vmul.f32 %v2195_v46, %v1891_v49 }
 0x2b2   : > { %1624 = vst.msk [vmem:[%s2718_s21 + $0x8] sm:$0xff] %vm530_vm0, %v1616_v11  ;;  %v1602_v19 = vmul.f32 %v1590_v12, %v2687_v61 }
 0x2b3   : > { %v2197_v26 = vpop.eup %2196  ;;  %1623 = vst.msk [vmem:[%s2718_s21] sm:$0xff] %vm530_vm0, %v1615_v35  ;;  %v1601_v54 = vmul.f32 %v1588_v16, %v2689_v0 }
 0x2b4   : > { %v2199_v45 = vpop.eup %2198  ;;  %v1618_v28 = vadd.f32 %v1610_v13, %v1602_v19  ;;  %v1594_v57 = vmul.f32 %v2197_v26, %v1894_v15 }
 0x2b5   : > { %v1617_v17 = vadd.f32 %v1609_v21, %v1601_v54  ;;  %v1592_v33 = vmul.f32 %v2199_v45, %v1893_v50 }
 0x2b6   : > { %1626 = vst.msk [vmem:[%s2718_s21 + $0x18] sm:$0xff] %vm530_vm0, %v1618_v28  ;;  %v1604_v61 = vmul.f32 %v1594_v57, %v2693_v9 }
 0x2b7   : > { %v2201_v20 = vpop.eup %2200  ;;  %1625 = vst.msk [vmem:[%s2718_s21 + $0x10] sm:$0xff] %vm530_vm0, %v1617_v17  ;;  %v1603_v0 = vmul.f32 %v1592_v33, %v2695_v25 }
 0x2b8   : > { %v2203_v39 = vpop.eup %2202  ;;  %v1620_v41 = vadd.f32 %v1612_v24, %v1604_v61  ;;  %v1598_v30 = vmul.f32 %v2201_v20, %v1896_v34 }
 0x2b9   : > { %v1619_v42 = vadd.f32 %v1611_v5, %v1603_v0  ;;  %v1596_v44 = vmul.f32 %v2203_v39, %v1895_v27 }
 0x2ba   : > { %1628 = vst.msk [vmem:[%s2718_s21 + $0x28] sm:$0xff] %vm530_vm0, %v1620_v41  ;;  %v1606_v9 = vmul.f32 %v1598_v30, %v2699_v4 }
 0x2bb   : > { %1627 = vst.msk [vmem:[%s2718_s21 + $0x20] sm:$0xff] %vm530_vm0, %v1619_v42  ;;  %v1605_v23 = vmul.f32 %v1596_v44, %v2701_v22 }
 0x2bc   : > { %v1622_v48 = vadd.f32 %v1614_v62, %v1606_v9 }
 0x2bd   : > { %v1621_v47 = vadd.f32 %v1613_v6, %v1605_v23 }
 0x2be   : > { %1630 = vst.msk [vmem:[%s2718_s21 + $0x38] sm:$0xff] %vm530_vm0, %v1622_v48 }
 0x2bf   : > { %1629 = vst.msk [vmem:[%s2718_s21 + $0x30] sm:$0xff] %vm530_vm0, %v1621_v47 }
 0x2c0 PF: > { %s18_s9 = sadd.s32 1, %s2242_s9   ;;  %s2774_s27 = smov %s2234_s29 }
 0x2c1   : > { %p15_p12 = scmp.ge.s32.totalorder %s18_s9, 10   ;;  %s2775_s28 = smov %s2238_s30 }
 0x2c2   : > { %s2776_s29 = smov %s2779_s10  ;;  %s2777_s30 = smov %s2783_s11 }
 0x2c3   :  { %17 = sbr.rel (!%p15_p12) target bundleno = 3 (0x3), region = 93 }

</bundles_post_ra>
